<compile_context>
chip_gen: v7x
topology: tpu7x:2x2x1
jax: 0.10.0
libtpu: 0.0.40
codegen_flags: <defaults>
</compile_context>

<pallas_src>
import functools
import math

import jax
import jax.numpy as jnp
from jax import lax
from jax.experimental import pallas as pl
from jax.experimental.pallas import tpu as pltpu


def _round_up(x, m):
    return ((x + m - 1) // m) * m


def _tree_max(parts):
    """Pairwise max reduction: ceil(log2 k) deep instead of k-1 deep."""
    while len(parts) > 1:
        nxt = [jnp.maximum(parts[i], parts[i + 1])
               for i in range(0, len(parts) - 1, 2)]
        if len(parts) % 2:
            nxt.append(parts[-1])
        parts = nxt
    return parts[0]


# --------------------------- the fused kernel --------------------------------

def _fused_cnn1d_kernel(*refs, B, SEG, n_phases, plan, L_last, compute_dtype):
    """Entire CNN1D forward; every activation stays in VMEM / vregs.

    refs = (phase_0 .. phase_{s0-1},                # (C0, B*SEG) conv-1 inputs
            [w_i (K,C_out,C_in), b_i (C_out,1)] per conv,
            w1 (C_last, L_last, 64), b1 (1,64), w2 (64,32), b2 (1,32),
            w3 (32,1), b3 (1,1),
            out (B,1))

    Layout: act[c, b*SEG + l] == (NCL) x[b, c, l]; SEG is a multiple of 128 so
    every per-batch base is lane-tile aligned, and a single slice act[:, t:t+W]
    provides tap t for all batches at once (pad columns hold garbage that valid
    outputs never read).
    """
    n_conv = sum(1 for p in plan if p[0] == "conv")
    phase_refs = refs[:n_phases]
    conv_refs = refs[n_phases:n_phases + 2 * n_conv]
    w1_ref, b1_ref, w2_ref, b2_ref, w3_ref, b3_ref = refs[n_phases + 2 * n_conv:-1]
    o_ref = refs[-1]

    width = B * SEG                       # current lane width of the activation
    act = None
    ci = 0
    for li, p in enumerate(plan):
        if p[0] == "conv":
            _, K, stride, relu = p
            w3d = conv_refs[2 * ci][...]                      # (K, C_out, C_in)
            bias = conv_refs[2 * ci + 1][...]                 # (C_out, 1)
            ci += 1
            if li == 0:
                # Pre-decimated phases: tap t reads phase (t % stride) at lane
                # offset t // stride -- contiguous slices, no strided access.
                srcs = [r[...].astype(compute_dtype) for r in phase_refs]
            else:
                srcs = [act.astype(compute_dtype)]            # stride == 1 here
            out_w = width - (K - 1) // stride
            acc = None
            for t in range(K):
                src = srcs[t % stride]
                off = t // stride
                d = jnp.dot(w3d[t], src[:, off:off + out_w],
                            preferred_element_type=jnp.float32)
                acc = d if acc is None else acc + d
            act = acc + bias
            width = out_w
        else:                                                  # maxpool, stride 1
            _, k, relu = p
            out_w = width - (k - 1)
            act = _tree_max([act[:, t:t + out_w] for t in range(k)])
            width = out_w
        if relu:
            act = jnp.maximum(act, 0.0)

    # Dense head.  The channel-major flatten (PyTorch .flatten(start_dim=1) on
    # the NCL tensor) is folded into w1 at init, so there is zero in-kernel
    # data reshuffling: h[b] = sum_c act[c, b*SEG : b*SEG+L_last] @ w1[c].
    C_last = w1_ref.shape[0]
    hs = [None] * B
    for c in range(C_last):
        w1c = w1_ref[c]                                        # (L_last, 64)
        for b in range(B):
            seg_row = act[c:c + 1, b * SEG:b * SEG + L_last].astype(compute_dtype)
            d = jnp.dot(seg_row, w1c, preferred_element_type=jnp.float32)
            hs[b] = d if hs[b] is None else hs[b] + d
    h = jnp.concatenate(hs, axis=0) if B > 1 else hs[0]        # (B, 64)
    h = jnp.maximum(h + b1_ref[...], 0.0)
    h = jnp.dot(h.astype(compute_dtype), w2_ref[...],
                preferred_element_type=jnp.float32) + b2_ref[...]
    h = jnp.maximum(h, 0.0)
    z = jnp.dot(h.astype(compute_dtype), w3_ref[...],
                preferred_element_type=jnp.float32) + b3_ref[...]
    # exp() rides the EUP slot; the (B, 1) divide is negligible.
    o_ref[...] = (1.0 / (1.0 + jnp.exp(-z))).astype(o_ref.dtype)


# --------------------------- module port --------------------------------------

class CNN1DPallas:
    """JAX/Pallas port of CNN.CNN1D (inference semantics).

    signal_len is a constructor arg (the PyTorch module hard-codes 2000) so the
    demo can run at a small size.
    """
    # TODO(synk): nn.Dropout is identity at inference; stochastic training-mode
    # dropout is not implemented.

    def __init__(self, layerparams, batch_size, signal_len, key, output_dim=1,
                 compute_dtype=jnp.float32, batch_block=None):
        # compute_dtype=jnp.bfloat16 casts matmul inputs (weights + act) to bf16
        # with f32 accumulation -- recommended on v6e/v7x; default keeps f32.
        # batch_block (multiple of 8, divides batch) enables a parallel batch
        # grid axis so v7x's two TensorCores split a large batch.
        self.batch_size = batch_size
        self.signal_len = signal_len
        self.output_dim = output_dim
        self.maxpools = [2, 5]
        self.compute_dtype = compute_dtype
        self.batch_block = batch_block

        self.C0 = layerparams[0]['in']
        self.K0 = layerparams[0]['kernel']
        self.s0 = layerparams[0]['stride']

        # ---- static layer plan, mirroring the PyTorch __init__/forward ------
        # relu is applied after layers whose *list index* is in maxpools, which
        # by construction is always (and only) the two MaxPool layers.
        plan = []
        reduction = signal_len
        cnt = 0                    # index in the PyTorch nn.ModuleList
        conv_dims = []
        for idx, p in enumerate(layerparams):
            K, s = p['kernel'], p['stride']
            if idx > 0 and s != 1:
                # TODO(synk): strided convs after the first would need in-kernel
                # re-decimation; not needed for the reference configuration.
                raise NotImplementedError("stride > 1 only supported for the first conv")
            reduction = self._reduction(reduction, K, s)
            if idx == 0:
                self.L1 = reduction
            plan.append(('conv', K, s, cnt in self.maxpools))
            conv_dims.append((p['in'], p['out'], K, s))
            cnt += 1
            if cnt in self.maxpools:
                k = 10 - cnt
                reduction = self._reduction(reduction, k, 1)
                plan.append(('pool', k, cnt in self.maxpools))
                cnt += 1
        self.plan = tuple(plan)
        self.C_last = layerparams[-1]['out']
        self.L_last = reduction
        self.feat_dim = self.C_last * reduction
        # Per-batch segment length, padded to a lane-tile multiple.  Covers the
        # longest phase and every later activation's valid length + tap slack.
        self.SEG = _round_up(-(-signal_len // self.s0), 128)

        # ---- parameters (PyTorch default-style init) -------------------------
        keys = jax.random.split(key, len(layerparams) + 3)
        ki = 0
        self.conv_params = []    # (w3d (K, C_out, C_in) in compute_dtype, bias (C_out,1) f32)
        self._ref_convs = []     # PyTorch-layout params for the pure-JAX reference
        for (C_in, C_out, K, s) in conv_dims:
            bound = 1.0 / math.sqrt(C_in * K)
            w_pt = jax.random.uniform(keys[ki], (C_out, C_in, K), jnp.float32,
                                      -bound, bound)
            b_pt = jax.random.uniform(jax.random.fold_in(keys[ki], 1), (C_out,),
                                      jnp.float32, -bound, bound)
            ki += 1
            w3d = jnp.transpose(w_pt, (2, 0, 1)).astype(compute_dtype)
            self.conv_params.append((w3d, b_pt.reshape(C_out, 1)))
            self._ref_convs.append((w_pt, b_pt, s))

        def linear(k_, in_f, out_f):
            bound = 1.0 / math.sqrt(in_f)
            w_pt = jax.random.uniform(k_, (out_f, in_f), jnp.float32, -bound, bound)
            b_pt = jax.random.uniform(jax.random.fold_in(k_, 1), (out_f,),
                                      jnp.float32, -bound, bound)
            return w_pt, b_pt

        w1_pt, b1_pt = linear(keys[ki], self.feat_dim, 64); ki += 1
        w2_pt, b2_pt = linear(keys[ki], 64, 32); ki += 1
        w3_pt, b3_pt = linear(keys[ki], 32, 1); ki += 1
        self._ref_dense = [(w1_pt, b1_pt), (w2_pt, b2_pt), (w3_pt, b3_pt)]
        # Fold the channel-major flatten into W1: (64, C_last*L_last) ->
        # (C_last, L_last, 64) so dense-1 runs directly on the (C, B*SEG) layout.
        w1_fold = w1_pt.T.reshape(self.C_last, self.L_last, 64).astype(compute_dtype)
        self.dense_params_flat = [
            w1_fold, b1_pt.reshape(1, 64),
            w2_pt.T.astype(compute_dtype), b2_pt.reshape(1, 32),
            w3_pt.T.astype(compute_dtype), b3_pt.reshape(1, 1),
        ]

        self._forward = jax.jit(self._make_forward())

    @staticmethod
    def _reduction(length, filter_size, stride):
        return -(-(length - filter_size + 1) // stride)   # ceil, matches PyTorch module

    def _make_forward(self):
        B, SEG, C0, s0 = self.batch_size, self.SEG, self.C0, self.s0
        cdt = self.compute_dtype
        plan = self.plan
        flat_params = []
        for w, b in self.conv_params:
            flat_params += [w, b]
        flat_params += self.dense_params_flat
        n_inputs = s0 + len(flat_params)
        vmem_limit = 32 * 1024 * 1024   # > v5e's 16 MiB default; safe on v6e/v7x

        if self.batch_block is not None and self.batch_block < B:
            # Parallel batch grid: each step handles batch_block segments, the
            # two v7x TensorCores split the grid.  batch_block should be a
            # multiple of 8 and divide B.
            Bc = self.batch_block
            assert B % Bc == 0, "batch_block must divide batch_size"
            kernel = functools.partial(
                _fused_cnn1d_kernel, B=Bc, SEG=SEG, n_phases=s0, plan=plan,
                L_last=self.L_last, compute_dtype=cdt)

            def _whole(shape):
                return pl.BlockSpec(shape, lambda i, _r=len(shape): (0,) * _r)

            in_specs = [pl.BlockSpec((C0, Bc * SEG), lambda i: (0, i))
                        for _ in range(s0)]
            in_specs += [_whole(a.shape) for a in flat_params]
            fused = pl.pallas_call(
                kernel,
                out_shape=jax.ShapeDtypeStruct((B, 1), jnp.float32),
                grid=(B // Bc,),
                in_specs=in_specs,
                out_specs=pl.BlockSpec((Bc, 1), lambda i: (i, 0)),
                compiler_params=pltpu.CompilerParams(
                    dimension_semantics=("parallel",),
                    vmem_limit_bytes=vmem_limit))
        else:
            # Grid-less single call: at small batch, launch/DMA overhead
            # dominates, so one fused step keeps everything on-chip.
            kernel = functools.partial(
                _fused_cnn1d_kernel, B=B, SEG=SEG, n_phases=s0, plan=plan,
                L_last=self.L_last, compute_dtype=cdt)
            vspec = pl.BlockSpec(memory_space=pltpu.MemorySpace.VMEM)
            fused = pl.pallas_call(
                kernel,
                out_shape=jax.ShapeDtypeStruct((B, 1), jnp.float32),
                in_specs=[vspec] * n_inputs,
                out_specs=pl.BlockSpec(memory_space=pltpu.MemorySpace.VMEM),
                compiler_params=pltpu.CompilerParams(vmem_limit_bytes=vmem_limit))

        def forward(x):
            # x: (B, L, C_in) -- same input the PyTorch module takes (it does
            # x.transpose(1, 2) itself).  The boundary transpose also splits the
            # signal into its `stride` phases (free strided slices) and pads
            # each batch segment to SEG (multiple of 128) for lane alignment.
            x = x.astype(jnp.float32)
            phases = []
            for ph in range(s0):
                xp = x[:, ph::s0, :][:, :SEG, :]               # (B, <=SEG, C0)
                xp = jnp.pad(xp, ((0, 0), (0, SEG - xp.shape[1]), (0, 0)))
                xp = jnp.transpose(xp, (2, 0, 1)).reshape(C0, B * SEG)
                phases.append(xp.astype(cdt))
            return fused(*phases, *flat_params).reshape(B)

        return forward

    def __call__(self, x):
        return self._forward(x)

    # ---- pure-JAX (non-Pallas) reference mirroring the PyTorch forward ----
    def reference_forward(self, x):
        y = jnp.transpose(x.astype(jnp.float32), (0, 2, 1))    # NCL
        ci = 0
        for p in self.plan:
            if p[0] == 'conv':
                w_pt, b_pt, stride = self._ref_convs[ci]
                ci += 1
                y = lax.conv_general_dilated(
                    y, w_pt, window_strides=(stride,), padding='VALID',
                    dimension_numbers=('NCH', 'OIH', 'NCH'),
                    precision=lax.Precision.HIGHEST)
                y = y + b_pt[None, :, None]
            else:
                k = p[1]
                y = lax.reduce_window(y, -jnp.inf, lax.max, (1, 1, k), (1, 1, 1),
                                      'VALID')
            if p[-1]:
                y = jnp.maximum(y, 0.0)
        feat = y.reshape(y.shape[0], -1)
        (w1, b1), (w2, b2), (w3, b3) = self._ref_dense
        h = jnp.maximum(jnp.dot(feat, w1.T, precision=lax.Precision.HIGHEST) + b1, 0.0)
        h = jnp.maximum(jnp.dot(h, w2.T, precision=lax.Precision.HIGHEST) + b2, 0.0)
        z = jnp.dot(h, w3.T, precision=lax.Precision.HIGHEST) + b3
        return (1.0 / (1.0 + jnp.exp(-z))).reshape(x.shape[0])


# --------------------------- demo ---------------------------------------------

if __name__ == "__main__":
    layerparams = [
        {'in': 4,  'out': 8,  'kernel': 5, 'stride': 2},
        {'in': 8,  'out': 16, 'kernel': 3, 'stride': 1},
        {'in': 16, 'out': 16, 'kernel': 3, 'stride': 1},
        {'in': 16, 'out': 8,  'kernel': 3, 'stride': 1},
    ]
    batch = 2
    signal_len = 200        # small stand-in for the module's 2000-sample signal

    key = jax.random.PRNGKey(0)
    k_param, k_x = jax.random.split(key)

    model = CNN1DPallas(layerparams, batch, signal_len, k_param)
    x = jax.random.normal(k_x, (batch, signal_len, layerparams[0]['in']), jnp.float32)

    out = jax.block_until_ready(model(x))
    ref = jax.block_until_ready(model.reference_forward(x))

    assert out.shape == (batch,)
    assert bool(jnp.all(jnp.isfinite(out)))
    assert bool(jnp.all((out > 0.0) & (out < 1.0)))               # sigmoid range
    assert bool(jnp.allclose(out, ref, rtol=1e-3, atol=1e-3)), (out, ref)
    print("KERNEL_OK")
</pallas_src>

<mosaic_0001>
module attributes {stable_mosaic.version = 11 : i64} {
  func.func @_fused_cnn1d_kernel(%arg0: memref<4x256xf32, #tpu.memory_space<vmem>>, %arg1: memref<4x256xf32, #tpu.memory_space<vmem>>, %arg2: memref<5x8x4xf32, #tpu.memory_space<vmem>>, %arg3: memref<8x1xf32, #tpu.memory_space<vmem>>, %arg4: memref<3x16x8xf32, #tpu.memory_space<vmem>>, %arg5: memref<16x1xf32, #tpu.memory_space<vmem>>, %arg6: memref<3x16x16xf32, #tpu.memory_space<vmem>>, %arg7: memref<16x1xf32, #tpu.memory_space<vmem>>, %arg8: memref<3x8x16xf32, #tpu.memory_space<vmem>>, %arg9: memref<8x1xf32, #tpu.memory_space<vmem>>, %arg10: memref<8x81x64xf32, #tpu.memory_space<vmem>>, %arg11: memref<1x64xf32, #tpu.memory_space<vmem>>, %arg12: memref<64x32xf32, #tpu.memory_space<vmem>>, %arg13: memref<1x32xf32, #tpu.memory_space<vmem>>, %arg14: memref<32x1xf32, #tpu.memory_space<vmem>>, %arg15: memref<1x1xf32, #tpu.memory_space<vmem>>, %arg16: memref<2x1xf32, #tpu.memory_space<vmem>>) attributes {dimension_semantics = [], scalar_prefetch = 0 : i64, scratch_operands = 0 : i64, tpu.core_type = #tpu.core_type<tc>} {
    %c0 = arith.constant 0 : index
    %c0_0 = arith.constant 0 : index
    %c0_1 = arith.constant 0 : index
    %0 = vector.load %arg2[%c0, %c0_0, %c0_1] : memref<5x8x4xf32, #tpu.memory_space<vmem>>, vector<5x8x4xf32>
    %c0_2 = arith.constant 0 : index
    %c0_3 = arith.constant 0 : index
    %1 = vector.load %arg3[%c0_2, %c0_3] : memref<8x1xf32, #tpu.memory_space<vmem>>, vector<8x1xf32>
    %c0_4 = arith.constant 0 : index
    %c0_5 = arith.constant 0 : index
    %2 = vector.load %arg0[%c0_4, %c0_5] : memref<4x256xf32, #tpu.memory_space<vmem>>, vector<4x256xf32>
    %c0_6 = arith.constant 0 : index
    %c0_7 = arith.constant 0 : index
    %3 = vector.load %arg1[%c0_6, %c0_7] : memref<4x256xf32, #tpu.memory_space<vmem>>, vector<4x256xf32>
    %4 = vector.extract_strided_slice %0 {offsets = [0, 0, 0], sizes = [1, 8, 4], strides = [1, 1, 1]} : vector<5x8x4xf32> to vector<1x8x4xf32>
    %5 = vector.shape_cast %4 : vector<1x8x4xf32> to vector<8x4xf32>
    %6 = vector.extract_strided_slice %2 {offsets = [0, 0], sizes = [4, 254], strides = [1, 1]} : vector<4x256xf32> to vector<4x254xf32>
    %cst = arith.constant dense<0.000000e+00> : vector<8x254xf32>
    %7 = tpu.matmul %5, %6, %cst {dimension_numbers = #tpu.dot_dimension_numbers<[1], [0], [0], [1], [0, 0, 1, 1], [], []>} : vector<8x4xf32>, vector<4x254xf32>, vector<8x254xf32> -> vector<8x254xf32>
    %8 = vector.extract_strided_slice %0 {offsets = [1, 0, 0], sizes = [1, 8, 4], strides = [1, 1, 1]} : vector<5x8x4xf32> to vector<1x8x4xf32>
    %9 = vector.shape_cast %8 : vector<1x8x4xf32> to vector<8x4xf32>
    %10 = vector.extract_strided_slice %3 {offsets = [0, 0], sizes = [4, 254], strides = [1, 1]} : vector<4x256xf32> to vector<4x254xf32>
    %cst_8 = arith.constant dense<0.000000e+00> : vector<8x254xf32>
    %11 = tpu.matmul %9, %10, %cst_8 {dimension_numbers = #tpu.dot_dimension_numbers<[1], [0], [0], [1], [0, 0, 1, 1], [], []>} : vector<8x4xf32>, vector<4x254xf32>, vector<8x254xf32> -> vector<8x254xf32>
    %12 = arith.addf %7, %11 : vector<8x254xf32>
    %13 = vector.extract_strided_slice %0 {offsets = [2, 0, 0], sizes = [1, 8, 4], strides = [1, 1, 1]} : vector<5x8x4xf32> to vector<1x8x4xf32>
    %14 = vector.shape_cast %13 : vector<1x8x4xf32> to vector<8x4xf32>
    %15 = vector.extract_strided_slice %2 {offsets = [0, 1], sizes = [4, 254], strides = [1, 1]} : vector<4x256xf32> to vector<4x254xf32>
    %cst_9 = arith.constant dense<0.000000e+00> : vector<8x254xf32>
    %16 = tpu.matmul %14, %15, %cst_9 {dimension_numbers = #tpu.dot_dimension_numbers<[1], [0], [0], [1], [0, 0, 1, 1], [], []>} : vector<8x4xf32>, vector<4x254xf32>, vector<8x254xf32> -> vector<8x254xf32>
    %17 = arith.addf %12, %16 : vector<8x254xf32>
    %18 = vector.extract_strided_slice %0 {offsets = [3, 0, 0], sizes = [1, 8, 4], strides = [1, 1, 1]} : vector<5x8x4xf32> to vector<1x8x4xf32>
    %19 = vector.shape_cast %18 : vector<1x8x4xf32> to vector<8x4xf32>
    %20 = vector.extract_strided_slice %3 {offsets = [0, 1], sizes = [4, 254], strides = [1, 1]} : vector<4x256xf32> to vector<4x254xf32>
    %cst_10 = arith.constant dense<0.000000e+00> : vector<8x254xf32>
    %21 = tpu.matmul %19, %20, %cst_10 {dimension_numbers = #tpu.dot_dimension_numbers<[1], [0], [0], [1], [0, 0, 1, 1], [], []>} : vector<8x4xf32>, vector<4x254xf32>, vector<8x254xf32> -> vector<8x254xf32>
    %22 = arith.addf %17, %21 : vector<8x254xf32>
    %23 = vector.extract_strided_slice %0 {offsets = [4, 0, 0], sizes = [1, 8, 4], strides = [1, 1, 1]} : vector<5x8x4xf32> to vector<1x8x4xf32>
    %24 = vector.shape_cast %23 : vector<1x8x4xf32> to vector<8x4xf32>
    %25 = vector.extract_strided_slice %2 {offsets = [0, 2], sizes = [4, 254], strides = [1, 1]} : vector<4x256xf32> to vector<4x254xf32>
    %cst_11 = arith.constant dense<0.000000e+00> : vector<8x254xf32>
    %26 = tpu.matmul %24, %25, %cst_11 {dimension_numbers = #tpu.dot_dimension_numbers<[1], [0], [0], [1], [0, 0, 1, 1], [], []>} : vector<8x4xf32>, vector<4x254xf32>, vector<8x254xf32> -> vector<8x254xf32>
    %27 = arith.addf %22, %26 : vector<8x254xf32>
    %28 = vector.broadcast %1 : vector<8x1xf32> to vector<8x254xf32>
    %29 = arith.addf %27, %28 : vector<8x254xf32>
    %c0_12 = arith.constant 0 : index
    %c0_13 = arith.constant 0 : index
    %c0_14 = arith.constant 0 : index
    %30 = vector.load %arg4[%c0_12, %c0_13, %c0_14] : memref<3x16x8xf32, #tpu.memory_space<vmem>>, vector<3x16x8xf32>
    %c0_15 = arith.constant 0 : index
    %c0_16 = arith.constant 0 : index
    %31 = vector.load %arg5[%c0_15, %c0_16] : memref<16x1xf32, #tpu.memory_space<vmem>>, vector<16x1xf32>
    %32 = vector.extract_strided_slice %30 {offsets = [0, 0, 0], sizes = [1, 16, 8], strides = [1, 1, 1]} : vector<3x16x8xf32> to vector<1x16x8xf32>
    %33 = vector.shape_cast %32 : vector<1x16x8xf32> to vector<16x8xf32>
    %34 = vector.extract_strided_slice %29 {offsets = [0, 0], sizes = [8, 252], strides = [1, 1]} : vector<8x254xf32> to vector<8x252xf32>
    %cst_17 = arith.constant dense<0.000000e+00> : vector<16x252xf32>
    %35 = tpu.matmul %33, %34, %cst_17 {dimension_numbers = #tpu.dot_dimension_numbers<[1], [0], [0], [1], [0, 0, 1, 1], [], []>} : vector<16x8xf32>, vector<8x252xf32>, vector<16x252xf32> -> vector<16x252xf32>
    %36 = vector.extract_strided_slice %30 {offsets = [1, 0, 0], sizes = [1, 16, 8], strides = [1, 1, 1]} : vector<3x16x8xf32> to vector<1x16x8xf32>
    %37 = vector.shape_cast %36 : vector<1x16x8xf32> to vector<16x8xf32>
    %38 = vector.extract_strided_slice %29 {offsets = [0, 1], sizes = [8, 252], strides = [1, 1]} : vector<8x254xf32> to vector<8x252xf32>
    %cst_18 = arith.constant dense<0.000000e+00> : vector<16x252xf32>
    %39 = tpu.matmul %37, %38, %cst_18 {dimension_numbers = #tpu.dot_dimension_numbers<[1], [0], [0], [1], [0, 0, 1, 1], [], []>} : vector<16x8xf32>, vector<8x252xf32>, vector<16x252xf32> -> vector<16x252xf32>
    %40 = arith.addf %35, %39 : vector<16x252xf32>
    %41 = vector.extract_strided_slice %30 {offsets = [2, 0, 0], sizes = [1, 16, 8], strides = [1, 1, 1]} : vector<3x16x8xf32> to vector<1x16x8xf32>
    %42 = vector.shape_cast %41 : vector<1x16x8xf32> to vector<16x8xf32>
    %43 = vector.extract_strided_slice %29 {offsets = [0, 2], sizes = [8, 252], strides = [1, 1]} : vector<8x254xf32> to vector<8x252xf32>
    %cst_19 = arith.constant dense<0.000000e+00> : vector<16x252xf32>
    %44 = tpu.matmul %42, %43, %cst_19 {dimension_numbers = #tpu.dot_dimension_numbers<[1], [0], [0], [1], [0, 0, 1, 1], [], []>} : vector<16x8xf32>, vector<8x252xf32>, vector<16x252xf32> -> vector<16x252xf32>
    %45 = arith.addf %40, %44 : vector<16x252xf32>
    %46 = vector.broadcast %31 : vector<16x1xf32> to vector<16x252xf32>
    %47 = arith.addf %45, %46 : vector<16x252xf32>
    %48 = vector.extract_strided_slice %47 {offsets = [0, 0], sizes = [16, 245], strides = [1, 1]} : vector<16x252xf32> to vector<16x245xf32>
    %49 = vector.extract_strided_slice %47 {offsets = [0, 1], sizes = [16, 245], strides = [1, 1]} : vector<16x252xf32> to vector<16x245xf32>
    %50 = vector.extract_strided_slice %47 {offsets = [0, 2], sizes = [16, 245], strides = [1, 1]} : vector<16x252xf32> to vector<16x245xf32>
    %51 = vector.extract_strided_slice %47 {offsets = [0, 3], sizes = [16, 245], strides = [1, 1]} : vector<16x252xf32> to vector<16x245xf32>
    %52 = vector.extract_strided_slice %47 {offsets = [0, 4], sizes = [16, 245], strides = [1, 1]} : vector<16x252xf32> to vector<16x245xf32>
    %53 = vector.extract_strided_slice %47 {offsets = [0, 5], sizes = [16, 245], strides = [1, 1]} : vector<16x252xf32> to vector<16x245xf32>
    %54 = vector.extract_strided_slice %47 {offsets = [0, 6], sizes = [16, 245], strides = [1, 1]} : vector<16x252xf32> to vector<16x245xf32>
    %55 = vector.extract_strided_slice %47 {offsets = [0, 7], sizes = [16, 245], strides = [1, 1]} : vector<16x252xf32> to vector<16x245xf32>
    %56 = arith.maximumf %48, %49 : vector<16x245xf32>
    %57 = arith.maximumf %50, %51 : vector<16x245xf32>
    %58 = arith.maximumf %52, %53 : vector<16x245xf32>
    %59 = arith.maximumf %54, %55 : vector<16x245xf32>
    %60 = arith.maximumf %56, %57 : vector<16x245xf32>
    %61 = arith.maximumf %58, %59 : vector<16x245xf32>
    %62 = arith.maximumf %60, %61 : vector<16x245xf32>
    %cst_20 = arith.constant 0.000000e+00 : f32
    %63 = vector.broadcast %cst_20 : f32 to vector<16x245xf32>
    %64 = arith.maximumf %62, %63 : vector<16x245xf32>
    %c0_21 = arith.constant 0 : index
    %c0_22 = arith.constant 0 : index
    %c0_23 = arith.constant 0 : index
    %65 = vector.load %arg6[%c0_21, %c0_22, %c0_23] : memref<3x16x16xf32, #tpu.memory_space<vmem>>, vector<3x16x16xf32>
    %c0_24 = arith.constant 0 : index
    %c0_25 = arith.constant 0 : index
    %66 = vector.load %arg7[%c0_24, %c0_25] : memref<16x1xf32, #tpu.memory_space<vmem>>, vector<16x1xf32>
    %67 = vector.extract_strided_slice %65 {offsets = [0, 0, 0], sizes = [1, 16, 16], strides = [1, 1, 1]} : vector<3x16x16xf32> to vector<1x16x16xf32>
    %68 = vector.shape_cast %67 : vector<1x16x16xf32> to vector<16x16xf32>
    %69 = vector.extract_strided_slice %64 {offsets = [0, 0], sizes = [16, 243], strides = [1, 1]} : vector<16x245xf32> to vector<16x243xf32>
    %cst_26 = arith.constant dense<0.000000e+00> : vector<16x243xf32>
    %70 = tpu.matmul %68, %69, %cst_26 {dimension_numbers = #tpu.dot_dimension_numbers<[1], [0], [0], [1], [0, 0, 1, 1], [], []>} : vector<16x16xf32>, vector<16x243xf32>, vector<16x243xf32> -> vector<16x243xf32>
    %71 = vector.extract_strided_slice %65 {offsets = [1, 0, 0], sizes = [1, 16, 16], strides = [1, 1, 1]} : vector<3x16x16xf32> to vector<1x16x16xf32>
    %72 = vector.shape_cast %71 : vector<1x16x16xf32> to vector<16x16xf32>
    %73 = vector.extract_strided_slice %64 {offsets = [0, 1], sizes = [16, 243], strides = [1, 1]} : vector<16x245xf32> to vector<16x243xf32>
    %cst_27 = arith.constant dense<0.000000e+00> : vector<16x243xf32>
    %74 = tpu.matmul %72, %73, %cst_27 {dimension_numbers = #tpu.dot_dimension_numbers<[1], [0], [0], [1], [0, 0, 1, 1], [], []>} : vector<16x16xf32>, vector<16x243xf32>, vector<16x243xf32> -> vector<16x243xf32>
    %75 = arith.addf %70, %74 : vector<16x243xf32>
    %76 = vector.extract_strided_slice %65 {offsets = [2, 0, 0], sizes = [1, 16, 16], strides = [1, 1, 1]} : vector<3x16x16xf32> to vector<1x16x16xf32>
    %77 = vector.shape_cast %76 : vector<1x16x16xf32> to vector<16x16xf32>
    %78 = vector.extract_strided_slice %64 {offsets = [0, 2], sizes = [16, 243], strides = [1, 1]} : vector<16x245xf32> to vector<16x243xf32>
    %cst_28 = arith.constant dense<0.000000e+00> : vector<16x243xf32>
    %79 = tpu.matmul %77, %78, %cst_28 {dimension_numbers = #tpu.dot_dimension_numbers<[1], [0], [0], [1], [0, 0, 1, 1], [], []>} : vector<16x16xf32>, vector<16x243xf32>, vector<16x243xf32> -> vector<16x243xf32>
    %80 = arith.addf %75, %79 : vector<16x243xf32>
    %81 = vector.broadcast %66 : vector<16x1xf32> to vector<16x243xf32>
    %82 = arith.addf %80, %81 : vector<16x243xf32>
    %c0_29 = arith.constant 0 : index
    %c0_30 = arith.constant 0 : index
    %c0_31 = arith.constant 0 : index
    %83 = vector.load %arg8[%c0_29, %c0_30, %c0_31] : memref<3x8x16xf32, #tpu.memory_space<vmem>>, vector<3x8x16xf32>
    %c0_32 = arith.constant 0 : index
    %c0_33 = arith.constant 0 : index
    %84 = vector.load %arg9[%c0_32, %c0_33] : memref<8x1xf32, #tpu.memory_space<vmem>>, vector<8x1xf32>
    %85 = vector.extract_strided_slice %83 {offsets = [0, 0, 0], sizes = [1, 8, 16], strides = [1, 1, 1]} : vector<3x8x16xf32> to vector<1x8x16xf32>
    %86 = vector.shape_cast %85 : vector<1x8x16xf32> to vector<8x16xf32>
    %87 = vector.extract_strided_slice %82 {offsets = [0, 0], sizes = [16, 241], strides = [1, 1]} : vector<16x243xf32> to vector<16x241xf32>
    %cst_34 = arith.constant dense<0.000000e+00> : vector<8x241xf32>
    %88 = tpu.matmul %86, %87, %cst_34 {dimension_numbers = #tpu.dot_dimension_numbers<[1], [0], [0], [1], [0, 0, 1, 1], [], []>} : vector<8x16xf32>, vector<16x241xf32>, vector<8x241xf32> -> vector<8x241xf32>
    %89 = vector.extract_strided_slice %83 {offsets = [1, 0, 0], sizes = [1, 8, 16], strides = [1, 1, 1]} : vector<3x8x16xf32> to vector<1x8x16xf32>
    %90 = vector.shape_cast %89 : vector<1x8x16xf32> to vector<8x16xf32>
    %91 = vector.extract_strided_slice %82 {offsets = [0, 1], sizes = [16, 241], strides = [1, 1]} : vector<16x243xf32> to vector<16x241xf32>
    %cst_35 = arith.constant dense<0.000000e+00> : vector<8x241xf32>
    %92 = tpu.matmul %90, %91, %cst_35 {dimension_numbers = #tpu.dot_dimension_numbers<[1], [0], [0], [1], [0, 0, 1, 1], [], []>} : vector<8x16xf32>, vector<16x241xf32>, vector<8x241xf32> -> vector<8x241xf32>
    %93 = arith.addf %88, %92 : vector<8x241xf32>
    %94 = vector.extract_strided_slice %83 {offsets = [2, 0, 0], sizes = [1, 8, 16], strides = [1, 1, 1]} : vector<3x8x16xf32> to vector<1x8x16xf32>
    %95 = vector.shape_cast %94 : vector<1x8x16xf32> to vector<8x16xf32>
    %96 = vector.extract_strided_slice %82 {offsets = [0, 2], sizes = [16, 241], strides = [1, 1]} : vector<16x243xf32> to vector<16x241xf32>
    %cst_36 = arith.constant dense<0.000000e+00> : vector<8x241xf32>
    %97 = tpu.matmul %95, %96, %cst_36 {dimension_numbers = #tpu.dot_dimension_numbers<[1], [0], [0], [1], [0, 0, 1, 1], [], []>} : vector<8x16xf32>, vector<16x241xf32>, vector<8x241xf32> -> vector<8x241xf32>
    %98 = arith.addf %93, %97 : vector<8x241xf32>
    %99 = vector.broadcast %84 : vector<8x1xf32> to vector<8x241xf32>
    %100 = arith.addf %98, %99 : vector<8x241xf32>
    %101 = vector.extract_strided_slice %100 {offsets = [0, 0], sizes = [8, 237], strides = [1, 1]} : vector<8x241xf32> to vector<8x237xf32>
    %102 = vector.extract_strided_slice %100 {offsets = [0, 1], sizes = [8, 237], strides = [1, 1]} : vector<8x241xf32> to vector<8x237xf32>
    %103 = vector.extract_strided_slice %100 {offsets = [0, 2], sizes = [8, 237], strides = [1, 1]} : vector<8x241xf32> to vector<8x237xf32>
    %104 = vector.extract_strided_slice %100 {offsets = [0, 3], sizes = [8, 237], strides = [1, 1]} : vector<8x241xf32> to vector<8x237xf32>
    %105 = vector.extract_strided_slice %100 {offsets = [0, 4], sizes = [8, 237], strides = [1, 1]} : vector<8x241xf32> to vector<8x237xf32>
    %106 = arith.maximumf %101, %102 : vector<8x237xf32>
    %107 = arith.maximumf %103, %104 : vector<8x237xf32>
    %108 = arith.maximumf %106, %107 : vector<8x237xf32>
    %109 = arith.maximumf %108, %105 : vector<8x237xf32>
    %cst_37 = arith.constant 0.000000e+00 : f32
    %110 = vector.broadcast %cst_37 : f32 to vector<8x237xf32>
    %111 = arith.maximumf %109, %110 : vector<8x237xf32>
    %c0_38 = arith.constant 0 : index
    %c0_39 = arith.constant 0 : index
    %c0_40 = arith.constant 0 : index
    %112 = vector.load %arg10[%c0_38, %c0_39, %c0_40] : memref<8x81x64xf32, #tpu.memory_space<vmem>>, vector<1x81x64xf32>
    %113 = vector.shape_cast %112 : vector<1x81x64xf32> to vector<81x64xf32>
    %114 = vector.extract_strided_slice %111 {offsets = [0, 0], sizes = [1, 81], strides = [1, 1]} : vector<8x237xf32> to vector<1x81xf32>
    %cst_41 = arith.constant dense<0.000000e+00> : vector<1x64xf32>
    %115 = tpu.matmul %114, %113, %cst_41 {dimension_numbers = #tpu.dot_dimension_numbers<[1], [0], [0], [1], [0, 0, 1, 1], [], []>} : vector<1x81xf32>, vector<81x64xf32>, vector<1x64xf32> -> vector<1x64xf32>
    %116 = vector.extract_strided_slice %111 {offsets = [0, 128], sizes = [1, 81], strides = [1, 1]} : vector<8x237xf32> to vector<1x81xf32>
    %cst_42 = arith.constant dense<0.000000e+00> : vector<1x64xf32>
    %117 = tpu.matmul %116, %113, %cst_42 {dimension_numbers = #tpu.dot_dimension_numbers<[1], [0], [0], [1], [0, 0, 1, 1], [], []>} : vector<1x81xf32>, vector<81x64xf32>, vector<1x64xf32> -> vector<1x64xf32>
    %c1 = arith.constant 1 : index
    %c0_43 = arith.constant 0 : index
    %c0_44 = arith.constant 0 : index
    %118 = vector.load %arg10[%c1, %c0_43, %c0_44] : memref<8x81x64xf32, #tpu.memory_space<vmem>>, vector<1x81x64xf32>
    %119 = vector.shape_cast %118 : vector<1x81x64xf32> to vector<81x64xf32>
    %120 = vector.extract_strided_slice %111 {offsets = [1, 0], sizes = [1, 81], strides = [1, 1]} : vector<8x237xf32> to vector<1x81xf32>
    %cst_45 = arith.constant dense<0.000000e+00> : vector<1x64xf32>
    %121 = tpu.matmul %120, %119, %cst_45 {dimension_numbers = #tpu.dot_dimension_numbers<[1], [0], [0], [1], [0, 0, 1, 1], [], []>} : vector<1x81xf32>, vector<81x64xf32>, vector<1x64xf32> -> vector<1x64xf32>
    %122 = arith.addf %115, %121 : vector<1x64xf32>
    %123 = vector.extract_strided_slice %111 {offsets = [1, 128], sizes = [1, 81], strides = [1, 1]} : vector<8x237xf32> to vector<1x81xf32>
    %cst_46 = arith.constant dense<0.000000e+00> : vector<1x64xf32>
    %124 = tpu.matmul %123, %119, %cst_46 {dimension_numbers = #tpu.dot_dimension_numbers<[1], [0], [0], [1], [0, 0, 1, 1], [], []>} : vector<1x81xf32>, vector<81x64xf32>, vector<1x64xf32> -> vector<1x64xf32>
    %125 = arith.addf %117, %124 : vector<1x64xf32>
    %c2 = arith.constant 2 : index
    %c0_47 = arith.constant 0 : index
    %c0_48 = arith.constant 0 : index
    %126 = vector.load %arg10[%c2, %c0_47, %c0_48] : memref<8x81x64xf32, #tpu.memory_space<vmem>>, vector<1x81x64xf32>
    %127 = vector.shape_cast %126 : vector<1x81x64xf32> to vector<81x64xf32>
    %128 = vector.extract_strided_slice %111 {offsets = [2, 0], sizes = [1, 81], strides = [1, 1]} : vector<8x237xf32> to vector<1x81xf32>
    %cst_49 = arith.constant dense<0.000000e+00> : vector<1x64xf32>
    %129 = tpu.matmul %128, %127, %cst_49 {dimension_numbers = #tpu.dot_dimension_numbers<[1], [0], [0], [1], [0, 0, 1, 1], [], []>} : vector<1x81xf32>, vector<81x64xf32>, vector<1x64xf32> -> vector<1x64xf32>
    %130 = arith.addf %122, %129 : vector<1x64xf32>
    %131 = vector.extract_strided_slice %111 {offsets = [2, 128], sizes = [1, 81], strides = [1, 1]} : vector<8x237xf32> to vector<1x81xf32>
    %cst_50 = arith.constant dense<0.000000e+00> : vector<1x64xf32>
    %132 = tpu.matmul %131, %127, %cst_50 {dimension_numbers = #tpu.dot_dimension_numbers<[1], [0], [0], [1], [0, 0, 1, 1], [], []>} : vector<1x81xf32>, vector<81x64xf32>, vector<1x64xf32> -> vector<1x64xf32>
    %133 = arith.addf %125, %132 : vector<1x64xf32>
    %c3 = arith.constant 3 : index
    %c0_51 = arith.constant 0 : index
    %c0_52 = arith.constant 0 : index
    %134 = vector.load %arg10[%c3, %c0_51, %c0_52] : memref<8x81x64xf32, #tpu.memory_space<vmem>>, vector<1x81x64xf32>
    %135 = vector.shape_cast %134 : vector<1x81x64xf32> to vector<81x64xf32>
    %136 = vector.extract_strided_slice %111 {offsets = [3, 0], sizes = [1, 81], strides = [1, 1]} : vector<8x237xf32> to vector<1x81xf32>
    %cst_53 = arith.constant dense<0.000000e+00> : vector<1x64xf32>
    %137 = tpu.matmul %136, %135, %cst_53 {dimension_numbers = #tpu.dot_dimension_numbers<[1], [0], [0], [1], [0, 0, 1, 1], [], []>} : vector<1x81xf32>, vector<81x64xf32>, vector<1x64xf32> -> vector<1x64xf32>
    %138 = arith.addf %130, %137 : vector<1x64xf32>
    %139 = vector.extract_strided_slice %111 {offsets = [3, 128], sizes = [1, 81], strides = [1, 1]} : vector<8x237xf32> to vector<1x81xf32>
    %cst_54 = arith.constant dense<0.000000e+00> : vector<1x64xf32>
    %140 = tpu.matmul %139, %135, %cst_54 {dimension_numbers = #tpu.dot_dimension_numbers<[1], [0], [0], [1], [0, 0, 1, 1], [], []>} : vector<1x81xf32>, vector<81x64xf32>, vector<1x64xf32> -> vector<1x64xf32>
    %141 = arith.addf %133, %140 : vector<1x64xf32>
    %c4 = arith.constant 4 : index
    %c0_55 = arith.constant 0 : index
    %c0_56 = arith.constant 0 : index
    %142 = vector.load %arg10[%c4, %c0_55, %c0_56] : memref<8x81x64xf32, #tpu.memory_space<vmem>>, vector<1x81x64xf32>
    %143 = vector.shape_cast %142 : vector<1x81x64xf32> to vector<81x64xf32>
    %144 = vector.extract_strided_slice %111 {offsets = [4, 0], sizes = [1, 81], strides = [1, 1]} : vector<8x237xf32> to vector<1x81xf32>
    %cst_57 = arith.constant dense<0.000000e+00> : vector<1x64xf32>
    %145 = tpu.matmul %144, %143, %cst_57 {dimension_numbers = #tpu.dot_dimension_numbers<[1], [0], [0], [1], [0, 0, 1, 1], [], []>} : vector<1x81xf32>, vector<81x64xf32>, vector<1x64xf32> -> vector<1x64xf32>
    %146 = arith.addf %138, %145 : vector<1x64xf32>
    %147 = vector.extract_strided_slice %111 {offsets = [4, 128], sizes = [1, 81], strides = [1, 1]} : vector<8x237xf32> to vector<1x81xf32>
    %cst_58 = arith.constant dense<0.000000e+00> : vector<1x64xf32>
    %148 = tpu.matmul %147, %143, %cst_58 {dimension_numbers = #tpu.dot_dimension_numbers<[1], [0], [0], [1], [0, 0, 1, 1], [], []>} : vector<1x81xf32>, vector<81x64xf32>, vector<1x64xf32> -> vector<1x64xf32>
    %149 = arith.addf %141, %148 : vector<1x64xf32>
    %c5 = arith.constant 5 : index
    %c0_59 = arith.constant 0 : index
    %c0_60 = arith.constant 0 : index
    %150 = vector.load %arg10[%c5, %c0_59, %c0_60] : memref<8x81x64xf32, #tpu.memory_space<vmem>>, vector<1x81x64xf32>
    %151 = vector.shape_cast %150 : vector<1x81x64xf32> to vector<81x64xf32>
    %152 = vector.extract_strided_slice %111 {offsets = [5, 0], sizes = [1, 81], strides = [1, 1]} : vector<8x237xf32> to vector<1x81xf32>
    %cst_61 = arith.constant dense<0.000000e+00> : vector<1x64xf32>
    %153 = tpu.matmul %152, %151, %cst_61 {dimension_numbers = #tpu.dot_dimension_numbers<[1], [0], [0], [1], [0, 0, 1, 1], [], []>} : vector<1x81xf32>, vector<81x64xf32>, vector<1x64xf32> -> vector<1x64xf32>
    %154 = arith.addf %146, %153 : vector<1x64xf32>
    %155 = vector.extract_strided_slice %111 {offsets = [5, 128], sizes = [1, 81], strides = [1, 1]} : vector<8x237xf32> to vector<1x81xf32>
    %cst_62 = arith.constant dense<0.000000e+00> : vector<1x64xf32>
    %156 = tpu.matmul %155, %151, %cst_62 {dimension_numbers = #tpu.dot_dimension_numbers<[1], [0], [0], [1], [0, 0, 1, 1], [], []>} : vector<1x81xf32>, vector<81x64xf32>, vector<1x64xf32> -> vector<1x64xf32>
    %157 = arith.addf %149, %156 : vector<1x64xf32>
    %c6 = arith.constant 6 : index
    %c0_63 = arith.constant 0 : index
    %c0_64 = arith.constant 0 : index
    %158 = vector.load %arg10[%c6, %c0_63, %c0_64] : memref<8x81x64xf32, #tpu.memory_space<vmem>>, vector<1x81x64xf32>
    %159 = vector.shape_cast %158 : vector<1x81x64xf32> to vector<81x64xf32>
    %160 = vector.extract_strided_slice %111 {offsets = [6, 0], sizes = [1, 81], strides = [1, 1]} : vector<8x237xf32> to vector<1x81xf32>
    %cst_65 = arith.constant dense<0.000000e+00> : vector<1x64xf32>
    %161 = tpu.matmul %160, %159, %cst_65 {dimension_numbers = #tpu.dot_dimension_numbers<[1], [0], [0], [1], [0, 0, 1, 1], [], []>} : vector<1x81xf32>, vector<81x64xf32>, vector<1x64xf32> -> vector<1x64xf32>
    %162 = arith.addf %154, %161 : vector<1x64xf32>
    %163 = vector.extract_strided_slice %111 {offsets = [6, 128], sizes = [1, 81], strides = [1, 1]} : vector<8x237xf32> to vector<1x81xf32>
    %cst_66 = arith.constant dense<0.000000e+00> : vector<1x64xf32>
    %164 = tpu.matmul %163, %159, %cst_66 {dimension_numbers = #tpu.dot_dimension_numbers<[1], [0], [0], [1], [0, 0, 1, 1], [], []>} : vector<1x81xf32>, vector<81x64xf32>, vector<1x64xf32> -> vector<1x64xf32>
    %165 = arith.addf %157, %164 : vector<1x64xf32>
    %c7 = arith.constant 7 : index
    %c0_67 = arith.constant 0 : index
    %c0_68 = arith.constant 0 : index
    %166 = vector.load %arg10[%c7, %c0_67, %c0_68] : memref<8x81x64xf32, #tpu.memory_space<vmem>>, vector<1x81x64xf32>
    %167 = vector.shape_cast %166 : vector<1x81x64xf32> to vector<81x64xf32>
    %168 = vector.extract_strided_slice %111 {offsets = [7, 0], sizes = [1, 81], strides = [1, 1]} : vector<8x237xf32> to vector<1x81xf32>
    %cst_69 = arith.constant dense<0.000000e+00> : vector<1x64xf32>
    %169 = tpu.matmul %168, %167, %cst_69 {dimension_numbers = #tpu.dot_dimension_numbers<[1], [0], [0], [1], [0, 0, 1, 1], [], []>} : vector<1x81xf32>, vector<81x64xf32>, vector<1x64xf32> -> vector<1x64xf32>
    %170 = arith.addf %162, %169 : vector<1x64xf32>
    %171 = vector.extract_strided_slice %111 {offsets = [7, 128], sizes = [1, 81], strides = [1, 1]} : vector<8x237xf32> to vector<1x81xf32>
    %cst_70 = arith.constant dense<0.000000e+00> : vector<1x64xf32>
    %172 = tpu.matmul %171, %167, %cst_70 {dimension_numbers = #tpu.dot_dimension_numbers<[1], [0], [0], [1], [0, 0, 1, 1], [], []>} : vector<1x81xf32>, vector<81x64xf32>, vector<1x64xf32> -> vector<1x64xf32>
    %173 = arith.addf %165, %172 : vector<1x64xf32>
    %174 = tpu.concatenate %170, %173 in 0 : vector<1x64xf32>, vector<1x64xf32> -> vector<2x64xf32>
    %c0_71 = arith.constant 0 : index
    %c0_72 = arith.constant 0 : index
    %175 = vector.load %arg11[%c0_71, %c0_72] : memref<1x64xf32, #tpu.memory_space<vmem>>, vector<1x64xf32>
    %176 = vector.broadcast %175 : vector<1x64xf32> to vector<2x64xf32>
    %177 = arith.addf %174, %176 : vector<2x64xf32>
    %cst_73 = arith.constant 0.000000e+00 : f32
    %178 = vector.broadcast %cst_73 : f32 to vector<2x64xf32>
    %179 = arith.maximumf %177, %178 : vector<2x64xf32>
    %c0_74 = arith.constant 0 : index
    %c0_75 = arith.constant 0 : index
    %180 = vector.load %arg12[%c0_74, %c0_75] : memref<64x32xf32, #tpu.memory_space<vmem>>, vector<64x32xf32>
    %cst_76 = arith.constant dense<0.000000e+00> : vector<2x32xf32>
    %181 = tpu.matmul %179, %180, %cst_76 {dimension_numbers = #tpu.dot_dimension_numbers<[1], [0], [0], [1], [0, 0, 1, 1], [], []>} : vector<2x64xf32>, vector<64x32xf32>, vector<2x32xf32> -> vector<2x32xf32>
    %c0_77 = arith.constant 0 : index
    %c0_78 = arith.constant 0 : index
    %182 = vector.load %arg13[%c0_77, %c0_78] : memref<1x32xf32, #tpu.memory_space<vmem>>, vector<1x32xf32>
    %183 = vector.broadcast %182 : vector<1x32xf32> to vector<2x32xf32>
    %184 = arith.addf %181, %183 : vector<2x32xf32>
    %cst_79 = arith.constant 0.000000e+00 : f32
    %185 = vector.broadcast %cst_79 : f32 to vector<2x32xf32>
    %186 = arith.maximumf %184, %185 : vector<2x32xf32>
    %c0_80 = arith.constant 0 : index
    %c0_81 = arith.constant 0 : index
    %187 = vector.load %arg14[%c0_80, %c0_81] : memref<32x1xf32, #tpu.memory_space<vmem>>, vector<32x1xf32>
    %cst_82 = arith.constant dense<0.000000e+00> : vector<2x1xf32>
    %188 = tpu.matmul %186, %187, %cst_82 {dimension_numbers = #tpu.dot_dimension_numbers<[1], [0], [0], [1], [0, 0, 1, 1], [], []>} : vector<2x32xf32>, vector<32x1xf32>, vector<2x1xf32> -> vector<2x1xf32>
    %c0_83 = arith.constant 0 : index
    %c0_84 = arith.constant 0 : index
    %189 = vector.load %arg15[%c0_83, %c0_84] : memref<1x1xf32, #tpu.memory_space<vmem>>, vector<1x1xf32>
    %190 = vector.broadcast %189 : vector<1x1xf32> to vector<2x1xf32>
    %191 = arith.addf %188, %190 : vector<2x1xf32>
    %cst_85 = arith.constant 0.000000e+00 : f32
    %192 = vector.broadcast %cst_85 : f32 to vector<2x1xf32>
    %193 = arith.subf %192, %191 : vector<2x1xf32>
    %194 = math.exp %193 : vector<2x1xf32>
    %cst_86 = arith.constant 1.000000e+00 : f32
    %195 = vector.broadcast %cst_86 : f32 to vector<2x1xf32>
    %196 = arith.addf %195, %194 : vector<2x1xf32>
    %cst_87 = arith.constant 1.000000e+00 : f32
    %197 = vector.broadcast %cst_87 : f32 to vector<2x1xf32>
    %198 = arith.divf %197, %196 : vector<2x1xf32>
    %c0_88 = arith.constant 0 : index
    %c0_89 = arith.constant 0 : index
    %199 = vector.load %arg16[%c0_88, %c0_89] : memref<2x1xf32, #tpu.memory_space<vmem>>, vector<2x1xf32>
    tpu.vector_store %arg16[%c0_88, %c0_89], %198 {strides = array<i32>} : memref<2x1xf32, #tpu.memory_space<vmem>>, vector<2x1xf32>,
    return
  }
}

</mosaic_0001>

<bundles_post_ra>
// kernel: forward.1
= control target key start
LH: loop header
LB: loop body
LE: loop exit
PB: predicated region body
PF: predicated region fallthrough
CT: control target
= control target key end

     0   :  { %s5014_s0 = inlined_call_operand.vmem [shape: f32[4,256], index: 0, kind: input, shape index: {}]   ;;  %s5015_s1 = inlined_call_operand.vmem [shape: f32[4,256], index: 1, kind: input, shape index: {}]   ;;  %s5016_s2 = inlined_call_operand.hbm [shape: f32[5,8,4], index: 2, kind: input, shape index: {}]   ;;  %s5017_s3 = inlined_call_operand.hbm [shape: f32[8,1], index: 3, kind: input, shape index: {}]   ;;  %s5018_s4 = inlined_call_operand.hbm [shape: f32[3,16,8], index: 4, kind: input, shape index: {}]   ;;  %s5019_s5 = inlined_call_operand.hbm [shape: f32[16,1], index: 5, kind: input, shape index: {}]   ;;  %s5020_s6 = inlined_call_operand.vmem [shape: f32[3,16,16], index: 6, kind: input, shape index: {}]   ;;  %s5021_s7 = inlined_call_operand.hbm [shape: f32[16,1], index: 7, kind: input, shape index: {}]   ;;  %s5022_s8 = inlined_call_operand.hbm [shape: f32[3,8,16], index: 8, kind: input, shape index: {}]   ;;  %s5023_s9 = inlined_call_operand.hbm [shape: f32[8,1], index: 9, kind: input, shape index: {}]   ;;  %s5024_s10 = inlined_call_operand.hbm [shape: f32[8,81,64], index: 10, kind: input, shape index: {}]   ;;  %s5025_s11 = inlined_call_operand.vmem [shape: f32[1,64], index: 11, kind: input, shape index: {}]   ;;  %s5026_s12 = inlined_call_operand.vmem [shape: f32[64,32], index: 12, kind: input, shape index: {}]   ;;  %s5027_s13 = inlined_call_operand.vmem [shape: f32[1,32], index: 13, kind: input, shape index: {}]   ;;  %s5028_s14 = inlined_call_operand.hbm [shape: f32[32,1], index: 14, kind: input, shape index: {}]   ;;  %s5029_s15 = inlined_call_operand.<no memory space> [shape: f32[1,1], index: 15, kind: input, shape index: {}]   ;;  %s5030_s16 = inlined_call_operand.vmem [shape: f32[2,1], index: 16, kind: output, shape index: {}]  }
   0x1   :  { %5031 = sst [smem:[#allocation22_spill]] %s5014_s0  ;;  %v21_v0 = vstv %s5029_s15 }
   0x2   :  { %22 = vst [vmem:[#allocation2] sm:$0x1] %v21_v0 }
   0x3   :  { %23 = vsyncpa [#allocation4], 0 }
   0x4   :  { %24 = vsyncpa [#allocation6], 0 }
   0x5   :  { %25 = vsyncpa [#allocation9], 0 }
   0x6   :  { %26 = vsyncpa [#allocation12], 0 }
   0x7   :  { %27 = vsyncpa [#allocation15], 0  ;;  %s4429_s23 = smov [#allocation5]   ;;  %s4221_s27 = scalar_lea.hbm %s5017_s3, 128 }
   0x8   :  { %s50_s24 = sshll.u32 %s4429_s23, 4  ;;  %p4222_p0 = scmp.ne.s32.totalorder %s5017_s3, %s4221_s27  ;;  %s51_s24 = int_to_ptr.vmem [resolvable:$true] %s50_s24 }
   0x9   :  { %p4225_p1 = scmp.lt.u32.totalorder %s4221_s27, %s5017_s3 }
   0xb   :  { %p4227_p2 = pnand %p4225_p1, %p4222_p0 }
   0xd   :  { %4230 = shalt.err (!%p4227_p2)
}
   0xe   :  { %s4231_s15 = scalar_lea.vmem %s51_s24, 128  ;;  %p4236_p4 = scmp.lt.s32.totalorder %s51_s24, %s51_s24 }
   0xf   :  { %p4232_p3 = scmp.ne.s32.totalorder %s51_s24, %s4231_s15  ;;  %p4237_p5 = scmp.lt.s32.totalorder %s4231_s15, %s4231_s15 }
  0x11   :  { %p4238_p6 = por %p4237_p5, %p4236_p4 }
  0x13   :  { %p4239_p7 = pnand %p4238_p6, %p4232_p3 }
  0x15   :  { %4242 = shalt.err (!%p4239_p7)
}
  0x16   :  { %53 = dma.hbm_to_vmem [thread:$0]  %s5017_s3, 128, %s51_s24, [#allocation6]  }
  0x17   :  { %s4430_s19 = smov [#allocation8]   ;;  %s4431_s21 = smov [#allocation11]  }
  0x18   :  { %s71_s20 = sshll.u32 %s4430_s19, 4  ;;  %s97_s22 = sshll.u32 %s4431_s21, 4  ;;  %s72_s20 = int_to_ptr.vmem [resolvable:$true] %s71_s20  ;;  %s98_s22 = int_to_ptr.vmem [resolvable:$true] %s97_s22 }
  0x19   :  { %s4243_s26 = scalar_lea.hbm %s5019_s5, 256 }
  0x1a   :  { %p4244_p8 = scmp.ne.s32.totalorder %s5019_s5, %s4243_s26  ;;  %p4247_p9 = scmp.lt.u32.totalorder %s4243_s26, %s5019_s5 }
  0x1c   :  { %p4249_p10 = pnand %p4247_p9, %p4244_p8 }
  0x1e   :  { %4252 = shalt.err (!%p4249_p10)
}
  0x1f   :  { %s4253_s3 = scalar_lea.vmem %s72_s20, 256  ;;  %p4258_p12 = scmp.lt.s32.totalorder %s72_s20, %s72_s20 }
  0x20   :  { %p4254_p11 = scmp.ne.s32.totalorder %s72_s20, %s4253_s3  ;;  %p4259_p13 = scmp.lt.s32.totalorder %s4253_s3, %s4253_s3 }
  0x22   :  { %p4260_p0 = por %p4259_p13, %p4258_p12 }
  0x24   :  { %p4261_p1 = pnand %p4260_p0, %p4254_p11 }
  0x26   :  { %4264 = shalt.err (!%p4261_p1)
}
  0x27   :  { %s4432_s24 = smov 128   ;;  %s4433_s0 = smov 8  }
  0x28   :  { %77 = dma.hbm_to_vmem [thread:$0]  %s5019_s5, 256, %s72_s20, [#allocation9], %s4432_s24, %s4432_s24, %s4433_s0  }
  0x29   :  { %s4265_s21 = scalar_lea.hbm %s5022_s8, 384 }
  0x2a   :  { %p4266_p2 = scmp.ne.s32.totalorder %s5022_s8, %s4265_s21  ;;  %p4269_p3 = scmp.lt.u32.totalorder %s4265_s21, %s5022_s8 }
  0x2c   :  { %p4271_p4 = pnand %p4269_p3, %p4266_p2 }
  0x2e   :  { %4274 = shalt.err (!%p4271_p4)
}
  0x2f   :  { %s4275_s28 = scalar_lea.vmem %s98_s22, 384  ;;  %p4280_p6 = scmp.lt.s32.totalorder %s98_s22, %s98_s22 }
  0x30   :  { %p4276_p5 = scmp.ne.s32.totalorder %s98_s22, %s4275_s28  ;;  %p4281_p7 = scmp.lt.s32.totalorder %s4275_s28, %s4275_s28 }
  0x32   :  { %p4282_p8 = por %p4281_p7, %p4280_p6 }
  0x34   :  { %p4283_p9 = pnand %p4282_p8, %p4276_p5 }
  0x36   :  { %4286 = shalt.err (!%p4283_p9)
}
  0x37   :  { %103 = dma.hbm_to_vmem [thread:$0]  %s5022_s8, 384, %s98_s22, [#allocation12], %s4432_s24, %s4432_s24, %s4433_s0  }
  0x38   :  { %s4434_s29 = smov [#allocation14]   ;;  %s4435_s3 = smov [#allocation3]  }
  0x39   :  { %s119_s30 = sshll.u32 %s4434_s29, 4  ;;  %s37_s15 = sshll.u32 %s4435_s3, 4  ;;  %s120_s30 = int_to_ptr.vmem [resolvable:$true] %s119_s30  ;;  %s38_s15 = int_to_ptr.vmem [resolvable:$true] %s37_s15 }
  0x3a   :  { %s4287_s19 = scalar_lea.hbm %s5024_s10, 11264 }
  0x3b   :  { %p4288_p10 = scmp.ne.s32.totalorder %s5024_s10, %s4287_s19  ;;  %p4291_p11 = scmp.lt.u32.totalorder %s4287_s19, %s5024_s10 }
  0x3d   :  { %p4293_p12 = pnand %p4291_p11, %p4288_p10 }
  0x3f   :  { %4296 = shalt.err (!%p4293_p12)
}
  0x40   :  { %s4297_s8 = scalar_lea.vmem %s120_s30, 11264  ;;  %p4302_p0 = scmp.lt.s32.totalorder %s120_s30, %s120_s30 }
  0x41   :  { %p4298_p13 = scmp.ne.s32.totalorder %s120_s30, %s4297_s8  ;;  %p4303_p1 = scmp.lt.s32.totalorder %s4297_s8, %s4297_s8 }
  0x43   :  { %p4304_p2 = por %p4303_p1, %p4302_p0 }
  0x45   :  { %p4305_p3 = pnand %p4304_p2, %p4298_p13 }
  0x47   :  { %4308 = shalt.err (!%p4305_p3)
}
  0x48   :  { %125 = dma.hbm_to_vmem [thread:$0]  %s5024_s10, 11264, %s120_s30, [#allocation15], %s4432_s24, %s4432_s24, %s4433_s0  }
  0x49   :  { %s4309_s20 = scalar_lea.hbm %s5016_s2, 640 }
  0x4a   :  { %p4310_p4 = scmp.ne.s32.totalorder %s5016_s2, %s4309_s20  ;;  %p4313_p5 = scmp.lt.u32.totalorder %s4309_s20, %s5016_s2 }
  0x4c   :  { %p4315_p6 = pnand %p4313_p5, %p4310_p4 }
  0x4e   :  { %4318 = shalt.err (!%p4315_p6)
}
  0x4f   :  { %s4319_s19 = scalar_lea.vmem %s38_s15, 640  ;;  %p4324_p8 = scmp.lt.s32.totalorder %s38_s15, %s38_s15 }
  0x50   :  { %p4320_p7 = scmp.ne.s32.totalorder %s38_s15, %s4319_s19  ;;  %p4325_p9 = scmp.lt.s32.totalorder %s4319_s19, %s4319_s19 }
  0x52   :  { %p4326_p10 = por %p4325_p9, %p4324_p8 }
  0x54   :  { %p4327_p11 = pnand %p4326_p10, %p4320_p7 }
  0x56   :  { %4330 = shalt.err (!%p4327_p11)
}
  0x57   :  { %43 = dma.hbm_to_vmem [thread:$0]  %s5016_s2, 640, %s38_s15, [#allocation4], %s4432_s24, %s4432_s24, %s4433_s0  }
  0x58   :  { %s4436_s21 = smov [#allocation7]   ;;  %s4437_s25 = smov [#allocation10]  }
  0x59   :  { %s59_s23 = sshll.u32 %s4436_s21, 4  ;;  %s85_s26 = sshll.u32 %s4437_s25, 4  ;;  %s60_s23 = int_to_ptr.vmem [resolvable:$true] %s59_s23  ;;  %s86_s26 = int_to_ptr.vmem [resolvable:$true] %s85_s26 }
  0x5a   :  { %s4331_s27 = scalar_lea.hbm %s5018_s4, 768 }
  0x5b   :  { %p4332_p12 = scmp.ne.s32.totalorder %s5018_s4, %s4331_s27  ;;  %p4335_p13 = scmp.lt.u32.totalorder %s4331_s27, %s5018_s4 }
  0x5d   :  { %p4337_p0 = pnand %p4335_p13, %p4332_p12 }
  0x5f   :  { %4340 = shalt.err (!%p4337_p0)
}
  0x60   :  { %s4341_s2 = scalar_lea.vmem %s60_s23, 768  ;;  %p4346_p2 = scmp.lt.s32.totalorder %s60_s23, %s60_s23 }
  0x61   :  { %p4342_p1 = scmp.ne.s32.totalorder %s60_s23, %s4341_s2  ;;  %p4347_p3 = scmp.lt.s32.totalorder %s4341_s2, %s4341_s2 }
  0x63   :  { %p4348_p4 = por %p4347_p3, %p4346_p2 }
  0x65   :  { %p4349_p5 = pnand %p4348_p4, %p4342_p1 }
  0x67   :  { %4352 = shalt.err (!%p4349_p5)
}
  0x68   :  { %65 = dma.hbm_to_vmem [thread:$0]  %s5018_s4, 768, %s60_s23, [#allocation6], %s4432_s24, %s4432_s24, %s4433_s0  }
  0x69   :  { %s4353_s19 = scalar_lea.hbm %s5021_s7, 256 }
  0x6a   :  { %p4354_p6 = scmp.ne.s32.totalorder %s5021_s7, %s4353_s19  ;;  %p4357_p7 = scmp.lt.u32.totalorder %s4353_s19, %s5021_s7 }
  0x6c   :  { %p4359_p8 = pnand %p4357_p7, %p4354_p6 }
  0x6e   :  { %4362 = shalt.err (!%p4359_p8)
}
  0x6f   :  { %s4363_s8 = scalar_lea.vmem %s86_s26, 256  ;;  %p4368_p10 = scmp.lt.s32.totalorder %s86_s26, %s86_s26 }
  0x70   :  { %p4364_p9 = scmp.ne.s32.totalorder %s86_s26, %s4363_s8  ;;  %p4369_p11 = scmp.lt.s32.totalorder %s4363_s8, %s4363_s8 }
  0x72   :  { %p4370_p12 = por %p4369_p11, %p4368_p10 }
  0x74   :  { %p4371_p13 = pnand %p4370_p12, %p4364_p9 }
  0x76   :  { %4374 = shalt.err (!%p4371_p13)
}
  0x77   :  { %91 = dma.hbm_to_vmem [thread:$0]  %s5021_s7, 256, %s86_s26, [#allocation9], %s4432_s24, %s4432_s24, %s4433_s0  }
  0x78   :  { %s4438_s22 = smov [#allocation13]   ;;  %s4439_s28 = smov [#allocation16]  }
  0x79   :  { %s110_s27 = sshll.u32 %s4438_s22, 4  ;;  %s137_s5 = sshll.u32 %s4439_s28, 4  ;;  %s111_s27 = int_to_ptr.vmem [resolvable:$true] %s110_s27  ;;  %s138_s5 = int_to_ptr.vmem [resolvable:$true] %s137_s5 }
  0x7a   :  { %s4375_s2 = scalar_lea.hbm %s5023_s9, 128 }
  0x7b   :  { %p4376_p0 = scmp.ne.s32.totalorder %s5023_s9, %s4375_s2  ;;  %p4379_p1 = scmp.lt.u32.totalorder %s4375_s2, %s5023_s9 }
  0x7d   :  { %p4381_p2 = pnand %p4379_p1, %p4376_p0 }
  0x7f   :  { %4384 = shalt.err (!%p4381_p2)
}
  0x80   :  { %s4385_s7 = scalar_lea.vmem %s111_s27, 128  ;;  %p4390_p4 = scmp.lt.s32.totalorder %s111_s27, %s111_s27 }
  0x81   :  { %p4386_p3 = scmp.ne.s32.totalorder %s111_s27, %s4385_s7  ;;  %p4391_p5 = scmp.lt.s32.totalorder %s4385_s7, %s4385_s7 }
  0x83   :  { %p4392_p6 = por %p4391_p5, %p4390_p4 }
  0x85   :  { %p4393_p7 = pnand %p4392_p6, %p4386_p3 }
  0x87   :  { %4396 = shalt.err (!%p4393_p7)
}
  0x88   :  { %113 = dma.hbm_to_vmem [thread:$0]  %s5023_s9, 128, %s111_s27, [#allocation12]  }
  0x89   :  { %s4397_s21 = scalar_lea.hbm %s5028_s14, 512 }
  0x8a   :  { %p4398_p8 = scmp.ne.s32.totalorder %s5028_s14, %s4397_s21  ;;  %p4401_p9 = scmp.lt.u32.totalorder %s4397_s21, %s5028_s14 }
  0x8c   :  { %p4403_p10 = pnand %p4401_p9, %p4398_p8 }
  0x8e   :  { %4406 = shalt.err (!%p4403_p10)
}
  0x8f   :  { %s4407_s22 = scalar_lea.vmem %s138_s5, 512  ;;  %p4412_p12 = scmp.lt.s32.totalorder %s138_s5, %s138_s5 }
  0x90   :  { %p4408_p11 = scmp.ne.s32.totalorder %s138_s5, %s4407_s22  ;;  %p4413_p13 = scmp.lt.s32.totalorder %s4407_s22, %s4407_s22 }
  0x92   :  { %p4414_p0 = por %p4413_p13, %p4412_p12 }
  0x94   :  { %p4415_p1 = pnand %p4414_p0, %p4408_p11 }
  0x96   :  { %4418 = shalt.err (!%p4415_p1)
}
  0x97   :  { %143 = dma.hbm_to_vmem [thread:$0]  %s5028_s14, 512, %s138_s5, [#allocation15], %s4432_s24, %s4432_s24, %s4433_s0  }
  0x98   :  { %4419 = dma.done.wait [#allocation4], 640  }
  0x99   :  { %4420 = vsyncadd [#allocation4], 4294966656 }
  0x9a   :  { %4421 = dma.done.wait [#allocation6], 896  }
  0x9b   :  { %4422 = vsyncadd [#allocation6], 4294966400 }
  0x9c   :  { %4423 = dma.done.wait [#allocation9], 512  }
  0x9d   :  { %4424 = vsyncadd [#allocation9], 4294966784 }
  0x9e   :  { %4425 = dma.done.wait [#allocation12], 512  }
  0x9f   :  { %4426 = vsyncadd [#allocation12], 4294966784 }
  0xa0   :  { %4427 = dma.done.wait [#allocation15], 11776  }
  0xa1   :  { %4428 = vsyncadd [#allocation15], 4294955520  ;;  %v4440_v1 = vmov 0.0   ;;  %s5032_s29 = sld [smem:[#allocation22_spill]]  ;;  %v180_v3 = vld [vmem:[%s5015_s1] sm:$0xff]  ;;  %vm187_vm0 = vcmask 1043456  }
  0xa2   :  { %256 = vmatprep.mubr.f32.mxu0 %v4440_v1  ;;  %695 = vmatprep.mubr.f32.mxu1 %v4440_v1  ;;  %s4441_s0 = smov 127   ;;  %v182_v5 = vcombine.high %v180_v3, %v180_v3  ;;  %v174_v6 = vld [vmem:[#allocation3 + $0x8] sm:$0xff]  ;;  %vm183_vm1 = vcmask 31744   ;;  %s4442_s1 = smov 126   ;;  %v173_v8 = vld [vmem:[#allocation3] sm:$0xff]  ;;  %v4443_v9 = vmov 0  }
  0xa3   :  { %429 = vrot.lane.b32.xlu1 %v180_v3, %s4441_s0  ;;  %v178_v7 = vld [vmem:[#allocation5] sm:$0xff]  ;;  %4143 = vset.pattern.permute.xlu0 %v4443_v9  ;;  %vm347_vm2 = vcmask 1039360   ;;  %v175_v13 = vld [vmem:[#allocation3 + $0x10] sm:$0xff]  ;;  %vm518_vm3 = vcmask 1031168   ;;  %v176_v19 = vld [vmem:[#allocation3 + $0x18] sm:$0xff]  ;;  %vm624_vm4 = vcmask 64512  }
  0xa4   :  { %3084 = vmatprep.subr.msk.mxu0 %vm187_vm0, %v182_v5  ;;  %4144 = vset.pattern.permute.xlu1 %v4443_v9  ;;  %v177_v21 = vld [vmem:[#allocation3 + $0x20] sm:$0xff]  ;;  %v614_v28 = vld [vmem:[#allocation8 + $0x8] sm:$0xff]  ;;  %v607_v35 = vld [vmem:[#allocation7] sm:$0xff]  ;;  %s4444_s5 = smov 124   ;;  %vm955_vm5 = vcmask 1014784   ;;  %vm996_vm6 = vcmask 130048  }
  0xa5   :  { %3085 = vmatpush1.msk.msra.mxu0 %vm187_vm0, %v180_v3  ;;  %v613_v26 = vld [vmem:[#allocation8] sm:$0xff]  ;;  %v610_v34 = vld [vmem:[#allocation7 + $0x18] sm:$0xff]  ;;  %v608_v38 = vld [vmem:[#allocation7 + $0x8] sm:$0xff]  ;;  %vm1606_vm7 = vcmask 1040384   ;;  %vm4446_vm8 = vmmov 0   ;;  %vm1603_vm9 = vcmask 662528  }
  0xa6   :  { %3086 = vmatmul.mubr.msk.f32.vlgmr.msra.gmra.mrb[0].mxu0 %vm183_vm1, %v174_v6  ;;  %v609_v31 = vld [vmem:[#allocation7 + $0x10] sm:$0xff]  ;;  %v611_v39 = vld [vmem:[#allocation7 + $0x20] sm:$0xff]  ;;  %v612_v40 = vld [vmem:[#allocation7 + $0x28] sm:$0xff]  ;;  %vm2907_vm10 = vcmask 523264   ;;  %vm2993_vm11 = vcmask 261120   ;;  %vm3073_vm12 = vcmask 1024  }
  0xa7   :  { %v179_v2 = vld [vmem:[%s5032_s29] sm:$0xff]  ;;  %431 = vrot.lane.b32.xlu1 %v182_v5, %s4441_s0  ;;  %336 = vmatprep.mubr.f32.mxu0 %v4440_v1 }
  0xa8   :  { %343 = vrot.lane.b32.xlu0 %v179_v2, %s4441_s0  ;;  %v264_v4 = vcombine.high %v179_v2, %v179_v2 }
  0xaa   :  { %3087 = vmatprep.subr.msk.mxu0 %vm187_vm0, %v264_v4 }
  0xab   :  { %3088 = vmatpush1.msk.msra.mxu0 %vm187_vm0, %v179_v2  ;;  %516 = vrot.lane.b32.xlu1 %v264_v4, %s4442_s1 }
  0xac   :  { %345 = vrot.lane.b32.xlu0 %v264_v4, %s4441_s0 }
  0xae   :  { %3089 = vmatmul.mubr.msk.f32.vlgmr.msra.gmra.mrb[0].mxu0 %vm183_vm1, %v173_v8 }
  0xaf   :  { %420 = vmatprep.mubr.f32.mxu0 %v4440_v1 }
  0xb0   :  { %514 = vrot.lane.b32.xlu0 %v179_v2, %s4442_s1 }
  0xb4   :  { %602 = vperm.xlu0 %4143, %v178_v7  }
 0x115   :  { %v430_v11 = vpop.permute.xlu1 %429 }
 0x119   :  { %v432_v14 = vpop.permute.xlu1 %431 }
 0x11a   :  { %v344_v10 = vpop.permute.xlu0 %343  ;;  %v433_v16 = vsel %vm347_vm2, %v430_v11, %v432_v14 }
 0x11d   :  { %v517_v17 = vpop.permute.xlu1 %516 }
 0x11e   :  { %v346_v12 = vpop.permute.xlu0 %345 }
 0x11f   :  { %v348_v15 = vsel %vm347_vm2, %v344_v10, %v346_v12  ;;  %3090 = vmatprep.subr.msk.mxu0 %vm187_vm0, %v346_v12 }
 0x120   :  { %3091 = vmatpush1.msk.msra.mxu0 %vm187_vm0, %v348_v15 }
 0x121   :  { %3092 = vmatmul.mubr.msk.f32.vlgmr.msra.gmra.mrb[0].mxu0 %vm183_vm1, %v175_v13  ;;  %3093 = vmatprep.subr.msk.mxu0 %vm187_vm0, %v432_v14 }
 0x122   :  { %3094 = vmatpush1.msk.msra.mxu0 %vm187_vm0, %v433_v16  ;;  %505 = vmatprep.mubr.f32.mxu0 %v4440_v1  ;;  %v515_v18 = vpop.permute.xlu0 %514 }
 0x123   :  { %3096 = vmatprep.subr.msk.mxu0 %vm187_vm0, %v517_v17  ;;  %v519_v20 = vsel %vm518_vm3, %v515_v18, %v517_v17 }
 0x129   :  { %3095 = vmatmul.mubr.msk.f32.vlgmr.msra.gmra.mrb[0].mxu0 %vm183_vm1, %v176_v19 }
 0x12a   :  { %3097 = vmatpush1.msk.msra.mxu0 %vm187_vm0, %v519_v20  ;;  %591 = vmatprep.mubr.f32.mxu0 %v4440_v1 }
 0x131   :  { %3098 = vmatmul.mubr.msk.f32.vlgmr.msra.gmra.mrb[0].mxu0 %vm183_vm1, %v177_v21 }
 0x132   :  { %1067 = vmatprep.mubr.f32.mxu0 %v4440_v1 }
 0x133   :  { %v603_v22 = vpop.permute.xlu0 %602 }
 0x204   :  { %v593_v23 = vpop.f32.mrb[0].mxu0 }
 0x205   :  { %v605_v24 = vadd.f32 %v603_v22, %v593_v23  ;;  %v595_v25 = vpop.f32.mrb[1].mxu0 }
 0x206   :  { %v606_v27 = vadd.f32 %v603_v22, %v595_v25 }
 0x207   :  { %791 = vrot.lane.b32.xlu0 %v605_v24, %s4442_s1  ;;  %617 = vrot.lane.b32.xlu1 %v605_v24, %s4441_s0 }
 0x20b   :  { %887 = vperm.xlu0 %4143, %v613_v26   ;;  %619 = vrot.lane.b32.xlu1 %v606_v27, %s4441_s0 }
 0x20f   :  { %793 = vrot.lane.b32.xlu1 %v606_v27, %s4442_s1 }
 0x213   :  { %892 = vperm.xlu1 %4144, %v614_v28  }
 0x279   :  { %v618_v29 = vpop.permute.xlu1 %617  ;;  %v792_v36 = vpop.permute.xlu0 %791 }
 0x27d   :  { %v620_v30 = vpop.permute.xlu1 %619 }
 0x27e   :  { %631 = vmatprep.subr.mxu1 %v620_v30  ;;  %v621_v32 = vsel %vm347_vm2, %v618_v29, %v620_v30 }
 0x27f   :  { %632 = vmatpush1.msra.mxu1 %v621_v32 }
 0x280   :  { %3099 = vmatmul.mubr.msk.f32.vlgmr.msra.gmra.mrb[0].mxu1 %vm624_vm4, %v609_v31  ;;  %714 = vmatprep.subr.mxu1 %v606_v27 }
 0x281   :  { %715 = vmatpush1.msra.mxu1 %v605_v24  ;;  %v794_v33 = vpop.permute.xlu1 %793  ;;  %701 = vmatprep.mubr.f32.mxu1 %v4440_v1 }
 0x282   :  { %804 = vmatprep.subr.mxu1 %v794_v33  ;;  %v795_v37 = vsel %vm518_vm3, %v792_v36, %v794_v33 }
 0x284   :  { %3100 = vmatmul.mubr.msk.f32.gmra.mrb[2].mxu1 %vm624_vm4, %v610_v34 }
 0x285   :  { %778 = vmatprep.mubr.f32.mxu1 %v4440_v1 }
 0x288   :  { %3101 = vmatmul.mubr.msk.f32.vlgmr.msra.gmra.mrb[0].mxu1 %vm624_vm4, %v607_v35 }
 0x289   :  { %805 = vmatpush1.msra.mxu1 %v795_v37  ;;  %784 = vmatprep.mubr.f32.mxu1 %v4440_v1 }
 0x28a   :  { %v888_v41 = vpop.permute.xlu0 %887 }
 0x28c   :  { %3102 = vmatmul.mubr.msk.f32.gmra.mrb[2].mxu1 %vm624_vm4, %v608_v38  ;;  %v976_v38 = vld [vmem:[#allocation10] sm:$0xff] }
 0x28d   :  { %868 = vmatprep.mubr.f32.mxu1 %v4440_v1 }
 0x290   :  { %3103 = vmatmul.mubr.msk.f32.vlgmr.msra.gmra.mrb[0].mxu1 %vm624_vm4, %v611_v39  ;;  %v977_v39 = vld [vmem:[#allocation10 + $0x8] sm:$0xff] }
 0x291   :  { %874 = vmatprep.mubr.f32.mxu1 %v4440_v1 }
 0x292   :  { %v893_v46 = vpop.permute.xlu1 %892 }
 0x294   :  { %3104 = vmatmul.mubr.msk.f32.gmra.mrb[2].mxu1 %vm624_vm4, %v612_v40 }
 0x295   :  { %1367 = vmatprep.mubr.f32.mxu1 %v4440_v1 }
 0x363   :  { %v870_v42 = vpop.f32.mrb[0].mxu1 }
 0x364   :  { %v895_v43 = vadd.f32 %v888_v41, %v870_v42  ;;  %v872_v44 = vpop.f32.mrb[1].mxu1 }
 0x365   :  { %v896_v45 = vadd.f32 %v888_v41, %v872_v44 }
 0x367   :  { %v4145_v47 = vpack.i.bf16 %v896_v45, %v895_v43  ;;  %v876_v48 = vpop.f32.mrb[2].mxu1 }
 0x368   :  { %v897_v49 = vadd.f32 %v893_v46, %v876_v48  ;;  %v878_v50 = vpop.f32.mrb[3].mxu1 }
 0x369   :  { %v898_v51 = vadd.f32 %v893_v46, %v878_v50  ;;  %4146 = vrot.lane.b32.xlu0 %v4145_v47, %s4441_s0 }
 0x36b   :  { %v4150_v52 = vpack.i.bf16 %v898_v51, %v897_v49 }
 0x36d   :  { %4151 = vrot.lane.b32.xlu1 %v4150_v52, %s4441_s0 }
 0x3db   :  { %v4147_v53 = vpop.permute.xlu0 %4146 }
 0x3dc   :  { %v4149_v54 = vunpack.i.h.bf16 %v4147_v53  ;;  %v4148_v55 = vunpack.i.l.bf16 %v4147_v53  ;;  %v972_v53 = vld [vmem:[%s5020_s6 + $0x10] sm:$0xff] }
 0x3de   :  { %v918_v56 = vmax.f32 %v896_v45, %v4149_v54  ;;  %v911_v57 = vsel %vm347_vm2, %v4148_v55, %v4149_v54 }
 0x3df   :  { %v4152_v58 = vpop.permute.xlu1 %4151  ;;  %v917_v59 = vmax.f32 %v895_v43, %v911_v57  ;;  %v973_v57 = vld [vmem:[%s5020_s6 + $0x18] sm:$0xff] }
 0x3e0   :  { %v4154_v60 = vunpack.i.h.bf16 %v4152_v58  ;;  %v4153_v61 = vunpack.i.l.bf16 %v4152_v58 }
 0x3e1   :  { %v4155_v62 = vpack.i.bf16 %v918_v56, %v917_v59 }
 0x3e2   :  { %v920_v63 = vmax.f32 %v898_v51, %v4154_v60  ;;  %v912_v0 = vsel %vm347_vm2, %v4153_v61, %v4154_v60  ;;  %v970_v60 = vld [vmem:[%s5020_s6] sm:$0xff] }
 0x3e3   :  { %4156 = vrot.lane.b32.xlu0 %v4155_v62, %s4442_s1  ;;  %v919_v2 = vmax.f32 %v897_v49, %v912_v0  ;;  %v974_v0 = vld [vmem:[%s5020_s6 + $0x20] sm:$0xff] }
 0x3e5   :  { %v4160_v3 = vpack.i.bf16 %v920_v63, %v919_v2 }
 0x3e7   :  { %4161 = vrot.lane.b32.xlu1 %v4160_v3, %s4442_s1 }
 0x455   :  { %v4157_v4 = vpop.permute.xlu0 %4156 }
 0x456   :  { %v4159_v5 = vunpack.i.h.bf16 %v4157_v4  ;;  %v4158_v6 = vunpack.i.l.bf16 %v4157_v4 }
 0x458   :  { %v940_v7 = vmax.f32 %v918_v56, %v4159_v5  ;;  %v933_v8 = vsel %vm518_vm3, %v4158_v6, %v4159_v5 }
 0x459   :  { %v4162_v9 = vpop.permute.xlu1 %4161  ;;  %v939_v10 = vmax.f32 %v917_v59, %v933_v8 }
 0x45a   :  { %v4164_v11 = vunpack.i.h.bf16 %v4162_v9  ;;  %v4163_v12 = vunpack.i.l.bf16 %v4162_v9 }
 0x45b   :  { %v4165_v13 = vpack.i.bf16 %v940_v7, %v939_v10 }
 0x45c   :  { %v942_v14 = vmax.f32 %v920_v63, %v4164_v11  ;;  %v934_v15 = vsel %vm518_vm3, %v4163_v12, %v4164_v11  ;;  %v971_v63 = vld [vmem:[%s5020_s6 + $0x8] sm:$0xff] }
 0x45d   :  { %4166 = vrot.lane.b32.xlu0 %v4165_v13, %s4444_s5  ;;  %v941_v16 = vmax.f32 %v919_v2, %v934_v15  ;;  %v975_v2 = vld [vmem:[%s5020_s6 + $0x28] sm:$0xff] }
 0x45f   :  { %v4170_v17 = vpack.i.bf16 %v942_v14, %v941_v16 }
 0x461   :  { %4171 = vrot.lane.b32.xlu1 %v4170_v17, %s4444_s5  ;;  %v1281_v17 = vld [vmem:[#allocation13] sm:$0xff] }
 0x4cf   :  { %v4167_v18 = vpop.permute.xlu0 %4166 }
 0x4d0   :  { %v4169_v19 = vunpack.i.h.bf16 %v4167_v18  ;;  %v4168_v20 = vunpack.i.l.bf16 %v4167_v18 }
 0x4d2   :  { %v963_v21 = vmax.f32 %v940_v7, %v4169_v19  ;;  %v956_v22 = vsel %vm955_vm5, %v4168_v20, %v4169_v19 }
 0x4d3   :  { %v962_v23 = vmax.f32 %v939_v10, %v956_v22  ;;  %v4172_v24 = vpop.permute.xlu1 %4171 }
 0x4d4   :  { %v967_v25 = vmax.f32 %v963_v21, 0.0  ;;  %v4174_v26 = vunpack.i.h.bf16 %v4172_v24  ;;  %v4173_v27 = vunpack.i.l.bf16 %v4172_v24 }
 0x4d5   :  { %v966_v28 = vmax.f32 %v962_v23, 0.0 }
 0x4d6   :  { %v965_v29 = vmax.f32 %v942_v14, %v4174_v26  ;;  %v957_v30 = vsel %vm955_vm5, %v4173_v27, %v4174_v26 }
 0x4d7   :  { %v964_v31 = vmax.f32 %v941_v16, %v957_v30  ;;  %v4175_v32 = vpack.i.bf16 %v967_v25, %v966_v28 }
 0x4d8   :  { %v969_v33 = vmax.f32 %v965_v29, 0.0 }
 0x4d9   :  { %v968_v34 = vmax.f32 %v964_v31, 0.0  ;;  %4176 = vrot.lane.b32.xlu0 %v4175_v32, %s4441_s0  ;;  %v1279_v31 = vld [vmem:[#allocation11 + $0x8] sm:$0xff] }
 0x4da   :  { %v3791_v35 = vpack.c.bf16 %v969_v33, %v967_v25 }
 0x4db   :  { %v4180_v36 = vpack.i.bf16 %v969_v33, %v968_v34  ;;  %v3793_v37 = vpack.c.bf16 %v968_v34, %v966_v28 }
 0x4dd   :  { %4186 = vrot.lane.b32.xlu0 %v4175_v32, %s4442_s1  ;;  %4181 = vrot.lane.b32.xlu1 %v4180_v36, %s4441_s0 }
 0x4e1   :  { %1266 = vperm.xlu0 %4143, %v976_v38   ;;  %4191 = vrot.lane.b32.xlu1 %v4180_v36, %s4442_s1 }
 0x4e5   :  { %1271 = vperm.xlu1 %4144, %v977_v39  }
 0x54b   :  { %v4177_v40 = vpop.permute.xlu0 %4176 }
 0x54c   :  { %v4179_v41 = vunpack.i.h.bf16 %v4177_v40  ;;  %v4178_v42 = vunpack.i.l.bf16 %v4177_v40  ;;  %v1280_v40 = vld [vmem:[#allocation11 + $0x10] sm:$0xff] }
 0x54e   :  { %v990_v46 = vsel %vm347_vm2, %v4178_v42, %v4179_v41  ;;  %v1591_v42 = vld [vmem:[#allocation14 + $0x60] sm:$0xff] }
 0x54f   :  { %v4182_v43 = vpop.permute.xlu1 %4181  ;;  %v4187_v49 = vpop.permute.xlu0 %4186 }
 0x550   :  { %v4184_v44 = vunpack.i.h.bf16 %v4182_v43  ;;  %v4183_v45 = vunpack.i.l.bf16 %v4182_v43  ;;  %v4189_v54 = vunpack.i.h.bf16 %v4187_v49  ;;  %v4188_v58 = vunpack.i.l.bf16 %v4187_v49  ;;  %v1592_v43 = vld [vmem:[#allocation14 + $0x68] sm:$0xff] }
 0x552   :  { %v3787_v47 = vpack.c.bf16 %v4184_v44, %v4179_v41  ;;  %v991_v48 = vsel %vm347_vm2, %v4183_v45, %v4184_v44  ;;  %v1171_v61 = vsel %vm518_vm3, %v4188_v58, %v4189_v54  ;;  %v1590_v41 = vld [vmem:[#allocation14 + $0x58] sm:$0xff]  ;;  %v4445_v44 = vmov 0.0|0.0  }
 0x553   :  { %v3789_v50 = vpack.c.bf16 %v991_v48, %v990_v46  ;;  %v4192_v51 = vpop.permute.xlu1 %4191  ;;  %v3812_v45 = vpack.c.bf16 %v1591_v42, %v1590_v41  ;;  %v1593_v46 = vld [vmem:[#allocation14 + $0x70] sm:$0xff]  ;;  %v1907_v42 = vld [vmem:[#allocation14 + $0xd8] sm:$0xff] }
 0x554   :  { %v4194_v52 = vunpack.i.h.bf16 %v4192_v51  ;;  %3788 = vmatprep.subr.bf16.mxu0 %v3787_v47  ;;  %v4193_v56 = vunpack.i.l.bf16 %v4192_v51  ;;  %v3815_v51 = vpack.c.bf16 %v1593_v46, %v1592_v43  ;;  %v1906_v41 = vld [vmem:[#allocation14 + $0xd0] sm:$0xff]  ;;  %v1909_v46 = vld [vmem:[#allocation14 + $0xe8] sm:$0xff] }
 0x555   :  { %3790 = vmatpush1.bf16.msra.mxu0 %v3789_v50  ;;  %v3878_v43 = vpack.c.bf16 %v1907_v42, %v1906_v41  ;;  %v2399_v41 = vld [vmem:[#allocation14 + $0x1f8] sm:$0xff]  ;;  %v2400_v42 = vld [vmem:[#allocation14 + $0x200] sm:$0xff] }
 0x556   :  { %3792 = vmatprep.subr.bf16.mxu0 %v3791_v35  ;;  %v3795_v55 = vpack.c.bf16 %v4194_v52, %v4189_v54  ;;  %v1172_v59 = vsel %vm518_vm3, %v4193_v56, %v4194_v52  ;;  %v1595_v54 = vld [vmem:[#allocation14 + $0x80] sm:$0xff]  ;;  %v1596_v56 = vld [vmem:[#allocation14 + $0x88] sm:$0xff] }
 0x557   :  { %v3797_v62 = vpack.c.bf16 %v1172_v59, %v1171_v61  ;;  %v1598_v59 = vld [vmem:[#allocation14 + $0x98] sm:$0xff] }
 0x558   :  { %3105 = vmatmul.mubr.msk.f32.vlgmr.msra.gmra.mrb[2].mxu0 %vm996_vm6, %v972_v53  ;;  %v1594_v53 = vld [vmem:[#allocation14 + $0x78] sm:$0xff] }
 0x559   :  { %3794 = vmatpush1.bf16.msra.mxu0 %v3793_v37  ;;  %1073 = vmatprep.mubr.f32.mxu0 %v4440_v1  ;;  %v1278_v37 = vld [vmem:[#allocation11] sm:$0xff] }
 0x55a   :  { %3796 = vmatprep.subr.bf16.mxu0 %v3795_v55  ;;  %v3818_v55 = vpack.c.bf16 %v1595_v54, %v1594_v53  ;;  %v1912_v53 = vld [vmem:[#allocation14 + $0x100] sm:$0x1] }
 0x55c   :  { %3106 = vmatmul.mubr.msk.f32.gmra.mrb[4].mxu0 %vm996_vm6, %v973_v57  ;;  %v1597_v57 = vld [vmem:[#allocation14 + $0x90] sm:$0xff] }
 0x55d   :  { %1150 = vmatprep.mubr.f32.mxu0 %v4440_v1  ;;  %v3821_v58 = vpack.c.bf16 %v1597_v57, %v1596_v56  ;;  %v2067_v56 = vld [vmem:[#allocation14 + $0x118] sm:$0xff]  ;;  %v2068_v57 = vld [vmem:[#allocation14 + $0x120] sm:$0xff] }
 0x560   :  { %3107 = vmatmul.mubr.msk.f32.vlgmr.msra.gmra.mrb[2].mxu0 %vm996_vm6, %v970_v60  ;;  %v1267_v3 = vpop.permute.xlu0 %1266  ;;  %v1599_v60 = vld [vmem:[#allocation14 + $0xa0] sm:$0xff] }
 0x561   :  { %3798 = vmatpush1.bf16.msra.mxu0 %v3797_v62  ;;  %1156 = vmatprep.mubr.f32.mxu0 %v4440_v1  ;;  %v3824_v61 = vpack.c.bf16 %v1599_v60, %v1598_v59  ;;  %v1600_v62 = vld [vmem:[#allocation14 + $0xa8] sm:$0x1]  ;;  %v3905_v59 = vpack.c.bf16 %v2068_v57, %v2067_v56  ;;  %v2560_v57 = vld [vmem:[#allocation14 + $0x240] sm:$0xff] }
 0x562   :  { %3841 = vmatprep.subr.bf16.mxu0 %v4445_v44  ;;  %v2069_v60 = vld [vmem:[#allocation14 + $0x128] sm:$0xff] }
 0x564   :  { %3108 = vmatmul.mubr.msk.f32.gmra.mrb[4].mxu0 %vm996_vm6, %v971_v63  ;;  %v1272_v8 = vpop.permute.xlu1 %1271 }
 0x565   :  { %1247 = vmatprep.mubr.f32.mxu0 %v4440_v1 }
 0x568   :  { %3109 = vmatmul.mubr.msk.f32.vlgmr.msra.gmra.mrb[2].mxu0 %vm996_vm6, %v974_v0 }
 0x569   :  { %1253 = vmatprep.mubr.f32.mxu0 %v4440_v1  ;;  %3843 = vmatpush3.bf16.msra.mxu0 %v3812_v45 }
 0x56a   :  { %3844 = vmatprep.subr.bf16.mxu0 %v4445_v44 }
 0x56c   :  { %3110 = vmatmul.mubr.msk.f32.gmra.mrb[4].mxu0 %vm996_vm6, %v975_v2 }
 0x56d   :  { %3846 = vmatpush3.bf16.msra.mxu0 %v3815_v51  ;;  %3429 = vmatprep.mubr.msk.f32.mxu0 %vm4446_vm8, %v4440_v1 }
 0x56e   :  { %3847 = vmatprep.subr.bf16.mxu0 %v4445_v44 }
 0x571   :  { %3849 = vmatpush3.bf16.msra.mxu0 %v3818_v55 }
 0x572   :  { %3850 = vmatprep.subr.bf16.mxu0 %v4445_v44 }
 0x575   :  { %3852 = vmatpush3.bf16.msra.mxu0 %v3821_v58 }
 0x576   :  { %3853 = vmatprep.subr.bf16.mxu0 %v4445_v44 }
 0x579   :  { %3855 = vmatpush3.bf16.msra.mxu0 %v3824_v61 }
 0x57a   :  { %3427 = vmatprep.subr.mxu0 %v4440_v1 }
 0x57d   :  { %3428 = vmatpush3.msk.msra.mxu0 %vm1606_vm7, %v1600_v62 }
 0x57e   :  { %3856 = vmatprep.subr.bf16.mxu0 %v4445_v44 }
 0x63b   :  { %v1249_v4 = vpop.f32.mrb[2].mxu0 }
 0x63c   :  { %v1274_v5 = vadd.f32 %v1267_v3, %v1249_v4  ;;  %v1251_v6 = vpop.f32.mrb[3].mxu0 }
 0x63d   :  { %v1275_v7 = vadd.f32 %v1267_v3, %v1251_v6 }
 0x63f   :  { %v1255_v9 = vpop.f32.mrb[4].mxu0  ;;  %v4195_v10 = vpack.i.bf16 %v1275_v7, %v1274_v5 }
 0x640   :  { %v1276_v11 = vadd.f32 %v1272_v8, %v1255_v9  ;;  %v1257_v12 = vpop.f32.mrb[5].mxu0 }
 0x641   :  { %v1277_v13 = vadd.f32 %v1272_v8, %v1257_v12  ;;  %4196 = vrot.lane.b32.xlu0 %v4195_v10, %s4441_s0 }
 0x642   :  { %v3805_v14 = vpack.c.bf16 %v1276_v11, %v1274_v5 }
 0x643   :  { %v4200_v15 = vpack.i.bf16 %v1277_v13, %v1276_v11  ;;  %v3803_v16 = vpack.c.bf16 %v1277_v13, %v1275_v7  ;;  %v1578_v13 = vld [vmem:[#allocation14] sm:$0xff] }
 0x645   :  { %4206 = vrot.lane.b32.xlu0 %v4195_v10, %s4442_s1  ;;  %4201 = vrot.lane.b32.xlu1 %v4200_v15, %s4441_s0 }
 0x649   :  { %1540 = vperm.xlu0 %4143, %v1281_v17   ;;  %4211 = vrot.lane.b32.xlu1 %v4200_v15, %s4442_s1 }
 0x6b3   :  { %v4197_v18 = vpop.permute.xlu0 %4196 }
 0x6b4   :  { %v4199_v19 = vunpack.i.h.bf16 %v4197_v18  ;;  %v4198_v20 = vunpack.i.l.bf16 %v4197_v18 }
 0x6b6   :  { %v1294_v24 = vsel %vm347_vm2, %v4198_v20, %v4199_v19 }
 0x6b7   :  { %v4202_v21 = vpop.permute.xlu1 %4201  ;;  %v4207_v27 = vpop.permute.xlu0 %4206 }
 0x6b8   :  { %v4204_v22 = vunpack.i.h.bf16 %v4202_v21  ;;  %v4203_v23 = vunpack.i.l.bf16 %v4202_v21  ;;  %v4209_v32 = vunpack.i.h.bf16 %v4207_v27  ;;  %v4208_v35 = vunpack.i.l.bf16 %v4207_v27  ;;  %v1580_v21 = vld [vmem:[#allocation14 + $0x10] sm:$0xff] }
 0x6ba   :  { %v3799_v25 = vpack.c.bf16 %v4204_v22, %v4199_v19  ;;  %v1295_v26 = vsel %vm347_vm2, %v4203_v23, %v4204_v22  ;;  %v1456_v38 = vsel %vm518_vm3, %v4208_v35, %v4209_v32  ;;  %v1581_v22 = vld [vmem:[#allocation14 + $0x18] sm:$0xff] }
 0x6bb   :  { %v3801_v28 = vpack.c.bf16 %v1295_v26, %v1294_v24  ;;  %v4212_v29 = vpop.permute.xlu1 %4211  ;;  %v3830_v24 = vpack.c.bf16 %v1581_v22, %v1580_v21  ;;  %v1583_v26 = vld [vmem:[#allocation14 + $0x28] sm:$0xff]  ;;  %v1903_v35 = vld [vmem:[#allocation14 + $0xb8] sm:$0xff] }
 0x6bc   :  { %v4214_v30 = vunpack.i.h.bf16 %v4212_v29  ;;  %3800 = vmatprep.subr.bf16.mxu1 %v3799_v25  ;;  %v4213_v34 = vunpack.i.l.bf16 %v4212_v29  ;;  %v1582_v25 = vld [vmem:[#allocation14 + $0x20] sm:$0xff]  ;;  %v1585_v29 = vld [vmem:[#allocation14 + $0x38] sm:$0xff] }
 0x6bd   :  { %3802 = vmatpush1.bf16.msra.mxu1 %v3801_v28  ;;  %v3833_v27 = vpack.c.bf16 %v1583_v26, %v1582_v25  ;;  %v1584_v28 = vld [vmem:[#allocation14 + $0x30] sm:$0xff]  ;;  %v2235_v21 = vld [vmem:[#allocation14 + $0x198] sm:$0xff] }
 0x6be   :  { %3804 = vmatprep.subr.bf16.mxu1 %v3803_v16  ;;  %v3807_v33 = vpack.c.bf16 %v4214_v30, %v4209_v32  ;;  %v1457_v36 = vsel %vm518_vm3, %v4213_v34, %v4214_v30  ;;  %v3836_v30 = vpack.c.bf16 %v1585_v29, %v1584_v28  ;;  %v1587_v32 = vld [vmem:[#allocation14 + $0x48] sm:$0xff]  ;;  %v1902_v34 = vld [vmem:[#allocation14 + $0xb0] sm:$0xff]  ;;  %v2391_v26 = vld [vmem:[#allocation14 + $0x1b8] sm:$0xff] }
 0x6bf   :  { %v3809_v39 = vpack.c.bf16 %v1457_v36, %v1456_v38  ;;  %v1588_v36 = vld [vmem:[#allocation14 + $0x50] sm:$0x1]  ;;  %v1904_v38 = vld [vmem:[#allocation14 + $0xc0] sm:$0xff] }
 0x6c0   :  { %3111 = vmatmul.mubr.msk.f32.vlgmr.msra.gmra.mrb[4].mxu1 %vm996_vm6, %v1279_v31  ;;  %v1586_v31 = vld [vmem:[#allocation14 + $0x40] sm:$0xff]  ;;  %v2238_v28 = vld [vmem:[#allocation14 + $0x1b0] sm:$0x1] }
 0x6c1   :  { %3806 = vmatpush1.bf16.msra.mxu1 %v3805_v14  ;;  %1441 = vmatprep.mubr.f32.mxu1 %v4440_v1  ;;  %v1579_v14 = vld [vmem:[#allocation14 + $0x8] sm:$0xff] }
 0x6c2   :  { %3808 = vmatprep.subr.bf16.mxu1 %v3807_v33  ;;  %v3827_v18 = vpack.c.bf16 %v1579_v14, %v1578_v13  ;;  %v3839_v33 = vpack.c.bf16 %v1587_v32, %v1586_v31  ;;  %v2393_v31 = vld [vmem:[#allocation14 + $0x1c8] sm:$0xff]  ;;  %v2394_v32 = vld [vmem:[#allocation14 + $0x1d0] sm:$0xff] }
 0x6c8   :  { %3112 = vmatmul.mubr.msk.f32.vlgmr.msra.gmra.mrb[4].mxu1 %vm996_vm6, %v1278_v37  ;;  %v1541_v47 = vpop.permute.xlu0 %1540  ;;  %v3872_v37 = vpack.c.bf16 %v1903_v35, %v1902_v34  ;;  %v3965_v34 = vpack.c.bf16 %v2394_v32, %v2393_v31  ;;  %v2395_v35 = vld [vmem:[#allocation14 + $0x1d8] sm:$0xff]  ;;  %v2982_v32 = vld [vmem:[#allocation16] sm:$0xff] }
 0x6c9   :  { %3810 = vmatpush1.bf16.msra.mxu1 %v3809_v39  ;;  %1529 = vmatprep.mubr.f32.mxu1 %v4440_v1  ;;  %v1905_v39 = vld [vmem:[#allocation14 + $0xc8] sm:$0xff] }
 0x6ca   :  { %3811 = vmatprep.subr.bf16.mxu1 %v4445_v44 }
 0x6d0   :  { %3113 = vmatmul.mubr.msk.f32.vlgmr.msra.gmra.mrb[4].mxu1 %vm996_vm6, %v1280_v40  ;;  %v3875_v40 = vpack.c.bf16 %v1905_v39, %v1904_v38  ;;  %v2397_v38 = vld [vmem:[#allocation14 + $0x1e8] sm:$0xff]  ;;  %v2398_v39 = vld [vmem:[#allocation14 + $0x1f0] sm:$0xff] }
 0x6d1   :  { %3813 = vmatpush3.bf16.msra.mxu1 %v3812_v45  ;;  %3379 = vmatprep.mubr.msk.f32.mxu1 %vm4446_vm8, %v4440_v1  ;;  %v1908_v45 = vld [vmem:[#allocation14 + $0xe0] sm:$0xff] }
 0x6d2   :  { %3814 = vmatprep.subr.bf16.mxu1 %v4445_v44 }
 0x6d5   :  { %3816 = vmatpush3.bf16.msra.mxu1 %v3815_v51  ;;  %v2065_v51 = vld [vmem:[#allocation14 + $0x108] sm:$0xff] }
 0x6d6   :  { %3817 = vmatprep.subr.bf16.mxu1 %v4445_v44 }
 0x6d9   :  { %3819 = vmatpush3.bf16.msra.mxu1 %v3818_v55 }
 0x6da   :  { %3820 = vmatprep.subr.bf16.mxu1 %v4445_v44 }
 0x6dd   :  { %3822 = vmatpush3.bf16.msra.mxu1 %v3821_v58 }
 0x6de   :  { %3823 = vmatprep.subr.bf16.mxu1 %v4445_v44 }
 0x6e1   :  { %3825 = vmatpush3.bf16.msra.mxu1 %v3824_v61  ;;  %v2070_v61 = vld [vmem:[#allocation14 + $0x130] sm:$0xff] }
 0x6e2   :  { %3377 = vmatprep.subr.mxu1 %v4440_v1 }
 0x6e5   :  { %3378 = vmatpush3.msk.msra.mxu1 %vm1606_vm7, %v1600_v62  ;;  %v3908_v62 = vpack.c.bf16 %v2070_v61, %v2069_v60  ;;  %v2562_v60 = vld [vmem:[#allocation14 + $0x250] sm:$0xff]  ;;  %v2563_v61 = vld [vmem:[#allocation14 + $0x258] sm:$0xff] }
 0x6e6   :  { %3826 = vmatprep.subr.bf16.mxu1 %v4445_v44 }
 0x7a3   :  { %v1531_v48 = vpop.f32.mrb[4].mxu1 }
 0x7a4   :  { %v1543_v49 = vadd.f32 %v1541_v47, %v1531_v48  ;;  %v1533_v50 = vpop.f32.mrb[5].mxu1  ;;  %v1910_v48 = vld [vmem:[#allocation14 + $0xf0] sm:$0xff] }
 0x7a5   :  { %v1544_v52 = vadd.f32 %v1541_v47, %v1533_v50  ;;  %v3881_v47 = vpack.c.bf16 %v1909_v46, %v1908_v45  ;;  %v2554_v45 = vld [vmem:[#allocation14 + $0x210] sm:$0xff]  ;;  %v2555_v46 = vld [vmem:[#allocation14 + $0x218] sm:$0xff] }
 0x7a6   :  { %1547 = vrot.lane.b32.xlu1 %v1543_v49, %s4441_s0 }
 0x7a7   :  { %1549 = vrot.lane.b32.xlu0 %v1544_v52, %s4441_s0 }
 0x818   :  { %v1548_v63 = vpop.permute.xlu1 %1547 }
 0x819   :  { %v1550_v0 = vpop.permute.xlu0 %1549 }
 0x81a   :  { %v1551_v2 = vsel %vm347_vm2, %v1548_v63, %v1550_v0  ;;  %v1555_v3 = vmax.f32 %v1544_v52, %v1550_v0  ;;  %v2071_v63 = vld [vmem:[#allocation14 + $0x138] sm:$0xff]  ;;  %v2072_v0 = vld [vmem:[#allocation14 + $0x140] sm:$0xff] }
 0x81b   :  { %v1554_v4 = vmax.f32 %v1543_v49, %v1551_v2  ;;  %v3911_v2 = vpack.c.bf16 %v2072_v0, %v2071_v63  ;;  %v2717_v63 = vld [vmem:[#allocation14 + $0x268] sm:$0xff]  ;;  %v2718_v0 = vld [vmem:[#allocation14 + $0x270] sm:$0xff] }
 0x81c   :  { %1560 = vrot.lane.b32.xlu1 %v1555_v3, %s4442_s1 }
 0x81d   :  { %1558 = vrot.lane.b32.xlu0 %v1554_v4, %s4442_s1 }
 0x820   :  { %1569 = vrot.lane.b32.xlu1 %v1544_v52, %s4444_s5  ;;  %v2066_v52 = vld [vmem:[#allocation14 + $0x110] sm:$0xff] }
 0x821   :  { %1567 = vrot.lane.b32.xlu0 %v1543_v49, %s4444_s5  ;;  %v1911_v49 = vld [vmem:[#allocation14 + $0xf8] sm:$0xff]  ;;  %v3902_v54 = vpack.c.bf16 %v2066_v52, %v2065_v51  ;;  %v2557_v51 = vld [vmem:[#allocation14 + $0x228] sm:$0xff] }
 0x822   :  { %v3884_v50 = vpack.c.bf16 %v1911_v49, %v1910_v48  ;;  %v3992_v48 = vpack.c.bf16 %v2555_v46, %v2554_v45  ;;  %v2984_v45 = vld [vmem:[#allocation16 + $0x10] sm:$0xff]  ;;  %v2985_v46 = vld [vmem:[#allocation16 + $0x18] sm:$0xff] }
 0x88e   :  { %v1561_v5 = vpop.permute.xlu1 %1560 }
 0x88f   :  { %v1559_v6 = vpop.permute.xlu0 %1558  ;;  %v1566_v8 = vmax.f32 %v1555_v3, %v1561_v5  ;;  %v2073_v3 = vld [vmem:[#allocation14 + $0x148] sm:$0xff] }
 0x890   :  { %v1562_v7 = vsel %vm518_vm3, %v1559_v6, %v1561_v5  ;;  %v2228_v6 = vld [vmem:[#allocation14 + $0x160] sm:$0xff] }
 0x891   :  { %v1565_v10 = vmax.f32 %v1554_v4, %v1562_v7  ;;  %v2074_v4 = vld [vmem:[#allocation14 + $0x150] sm:$0xff]  ;;  %v2229_v7 = vld [vmem:[#allocation14 + $0x168] sm:$0xff] }
 0x892   :  { %v1570_v9 = vpop.permute.xlu1 %1569  ;;  %v3914_v5 = vpack.c.bf16 %v2074_v4, %v2073_v3  ;;  %v4022_v3 = vpack.c.bf16 %v2718_v0, %v2717_v63 }
 0x893   :  { %v1575_v11 = vmax.f32 %v1566_v8, %v1570_v9  ;;  %v1568_v12 = vpop.permute.xlu0 %1567  ;;  %v2075_v8 = vld [vmem:[#allocation14 + $0x158] sm:$0x1] }
 0x894   :  { %v1571_v15 = vsel %vm955_vm5, %v1568_v12, %v1570_v9  ;;  %v3932_v9 = vpack.c.bf16 %v2229_v7, %v2228_v6  ;;  %v2231_v12 = vld [vmem:[#allocation14 + $0x178] sm:$0xff]  ;;  %v2720_v6 = vld [vmem:[#allocation14 + $0x280] sm:$0xff] }
 0x895   :  { %v4810_v16 = vmax.f32 %v1575_v11, 0.0  ;;  %v1574_v17 = vmax.f32 %v1565_v10, %v1571_v15  ;;  %v2230_v11 = vld [vmem:[#allocation14 + $0x170] sm:$0xff]  ;;  %v2232_v15 = vld [vmem:[#allocation14 + $0x180] sm:$0xff] }
 0x896   :  { %v3935_v14 = vpack.c.bf16 %v2231_v12, %v2230_v11  ;;  %v2723_v12 = vld [vmem:[#allocation14 + $0x298] sm:$0xff] }
 0x897   :  { %v4812_v19 = vmax.f32 %v1574_v17, 0.0  ;;  %v1756_v20 = vrot.slane %v4810_v16, 1  ;;  %v1990_v55 = vrot.slane %v4810_v16, 2  ;;  %v2153_v10 = vrot.slane %v4810_v16, 3  ;;  %v2233_v17 = vld [vmem:[#allocation14 + $0x188] sm:$0xff] }
 0x898   :  { %v2479_v49 = vrot.slane %v4810_v16, 5  ;;  %v2642_v4 = vrot.slane %v4810_v16, 6 }
 0x899   :  { %3430 = vmatmul.mubr.msk.f32.vlgmr.msra.gmra.mrb[6].mxu0 %vm1603_vm9, %v1756_v20  ;;  %v1602_v23 = vrot.slane %v4812_v19, 1  ;;  %v1913_v58 = vrot.slane %v4812_v19, 2  ;;  %v2076_v13 = vrot.slane %v4812_v19, 3  ;;  %v2234_v20 = vld [vmem:[#allocation14 + $0x190] sm:$0xff]  ;;  %v2402_v52 = vrot.slane %v4812_v19, 5 }
 0x89a   :  { %3858 = vmatpush3.bf16.msra.mxu0 %v3827_v18  ;;  %3454 = vmatprep.mubr.msk.f32.mxu0 %vm4446_vm8, %v4440_v1  ;;  %v3941_v22 = vpack.c.bf16 %v2235_v21, %v2234_v20  ;;  %v2565_v7 = vrot.slane %v4812_v19, 6  ;;  %v2727_v20 = vld [vmem:[#allocation14 + $0x2b8] sm:$0x1]  ;;  %v2892_v21 = vld [vmem:[%s5026_s12] sm:$0xff] }
 0x89b   :  { %3380 = vmatmul.mubr.msk.f32.vlgmr.msra.gmra.mrb[6].mxu1 %vm1603_vm9, %v1602_v23  ;;  %3859 = vmatprep.subr.bf16.mxu0 %v4445_v44  ;;  %v2236_v23 = vld [vmem:[#allocation14 + $0x1a0] sm:$0xff] }
 0x89c   :  { %3828 = vmatpush3.bf16.msra.mxu1 %v3827_v18  ;;  %3404 = vmatprep.mubr.msk.f32.mxu1 %vm4446_vm8, %v4440_v1  ;;  %v3938_v18 = vpack.c.bf16 %v2233_v17, %v2232_v15  ;;  %v2725_v15 = vld [vmem:[#allocation14 + $0x2a8] sm:$0xff]  ;;  %v2726_v17 = vld [vmem:[#allocation14 + $0x2b0] sm:$0xff] }
 0x89d   :  { %3829 = vmatprep.subr.bf16.mxu1 %v4445_v44 }
 0x89e   :  { %3861 = vmatpush3.bf16.msra.mxu0 %v3830_v24 }
 0x89f   :  { %3862 = vmatprep.subr.bf16.mxu0 %v4445_v44 }
 0x8a0   :  { %3831 = vmatpush3.bf16.msra.mxu1 %v3830_v24  ;;  %v2237_v24 = vld [vmem:[#allocation14 + $0x1a8] sm:$0xff] }
 0x8a1   :  { %3832 = vmatprep.subr.bf16.mxu1 %v4445_v44  ;;  %v3944_v25 = vpack.c.bf16 %v2237_v24, %v2236_v23  ;;  %v2805_v23 = vrot.slane %v4810_v16, 7 }
 0x8a2   :  { %3864 = vmatpush3.bf16.msra.mxu0 %v3833_v27 }
 0x8a3   :  { %3865 = vmatprep.subr.bf16.mxu0 %v4445_v44 }
 0x8a4   :  { %3834 = vmatpush3.bf16.msra.mxu1 %v3833_v27  ;;  %v2392_v27 = vld [vmem:[#allocation14 + $0x1c0] sm:$0xff] }
 0x8a5   :  { %3835 = vmatprep.subr.bf16.mxu1 %v4445_v44  ;;  %v3962_v29 = vpack.c.bf16 %v2392_v27, %v2391_v26  ;;  %v2894_v26 = vld [vmem:[%s5026_s12 + $0x10] sm:$0xff]  ;;  %v2895_v27 = vld [vmem:[%s5026_s12 + $0x18] sm:$0xff] }
 0x8a6   :  { %3867 = vmatpush3.bf16.msra.mxu0 %v3836_v30 }
 0x8a7   :  { %3868 = vmatprep.subr.bf16.mxu0 %v4445_v44 }
 0x8a8   :  { %3837 = vmatpush3.bf16.msra.mxu1 %v3836_v30  ;;  %v2316_v30 = vrot.slane %v4810_v16, 4 }
 0x8a9   :  { %3838 = vmatprep.subr.bf16.mxu1 %v4445_v44 }
 0x8aa   :  { %3870 = vmatpush3.bf16.msra.mxu0 %v3839_v33 }
 0x8ab   :  { %3452 = vmatprep.subr.mxu0 %v4440_v1 }
 0x8ac   :  { %3840 = vmatpush3.bf16.msra.mxu1 %v3839_v33  ;;  %v2239_v33 = vrot.slane %v4812_v19, 4 }
 0x8ad   :  { %3402 = vmatprep.subr.mxu1 %v4440_v1 }
 0x8ae   :  { %3453 = vmatpush3.msk.msra.mxu0 %vm1606_vm7, %v1588_v36 }
 0x8af   :  { %3455 = vmatmul.mubr.msk.f32.vlgmr.msra.gmra.mrb[6].mxu0 %vm1603_vm9, %v4810_v16  ;;  %3886 = vmatprep.subr.bf16.mxu0 %v4445_v44  ;;  %v4055_v16 = vpack.c.bf16 %v2895_v27, %v2894_v26 }
 0x8b0   :  { %3403 = vmatpush3.msk.msra.mxu1 %vm1606_vm7, %v1588_v36  ;;  %3888 = vmatpush3.bf16.msra.mxu0 %v3872_v37  ;;  %v2396_v36 = vld [vmem:[#allocation14 + $0x1e0] sm:$0xff] }
 0x8b1   :  { %3405 = vmatmul.mubr.msk.f32.vlgmr.msra.gmra.mrb[6].mxu1 %vm1603_vm9, %v4812_v19  ;;  %3871 = vmatprep.subr.bf16.mxu1 %v4445_v44 }
 0x8b2   :  { %3873 = vmatpush3.bf16.msra.mxu1 %v3872_v37  ;;  %3889 = vmatprep.subr.bf16.mxu0 %v4445_v44  ;;  %v3968_v37 = vpack.c.bf16 %v2396_v36, %v2395_v35 }
 0x8b3   :  { %3874 = vmatprep.subr.bf16.mxu1 %v4445_v44  ;;  %3504 = vmatprep.mubr.msk.f32.mxu0 %vm4446_vm8, %v4440_v1 }
 0x8b4   :  { %3891 = vmatpush3.bf16.msra.mxu0 %v3875_v40  ;;  %3479 = vmatprep.mubr.msk.f32.mxu1 %vm4446_vm8, %v4440_v1 }
 0x8b5   :  { %3892 = vmatprep.subr.bf16.mxu0 %v4445_v44 }
 0x8b6   :  { %3876 = vmatpush3.bf16.msra.mxu1 %v3875_v40  ;;  %v3971_v40 = vpack.c.bf16 %v2398_v39, %v2397_v38  ;;  %v3146_v38 = vld [vmem:[%s5025_s11] ss:$0 sm:$0xff] }
 0x8b7   :  { %3877 = vmatprep.subr.bf16.mxu1 %v4445_v44 }
 0x8b8   :  { %3894 = vmatpush3.bf16.msra.mxu0 %v3878_v43 }
 0x8b9   :  { %3895 = vmatprep.subr.bf16.mxu0 %v4445_v44 }
 0x8ba   :  { %3879 = vmatpush3.bf16.msra.mxu1 %v3878_v43  ;;  %v3974_v43 = vpack.c.bf16 %v2400_v42, %v2399_v41 }
 0x8bb   :  { %3880 = vmatprep.subr.bf16.mxu1 %v4445_v44 }
 0x8bc   :  { %3897 = vmatpush3.bf16.msra.mxu0 %v3881_v47 }
 0x8bd   :  { %3898 = vmatprep.subr.bf16.mxu0 %v4445_v44 }
 0x8be   :  { %3882 = vmatpush3.bf16.msra.mxu1 %v3881_v47  ;;  %v2401_v47 = vld [vmem:[#allocation14 + $0x208] sm:$0x1] }
 0x8bf   :  { %3883 = vmatprep.subr.bf16.mxu1 %v4445_v44 }
 0x8c0   :  { %3900 = vmatpush3.bf16.msra.mxu0 %v3884_v50 }
 0x8c1   :  { %3502 = vmatprep.subr.mxu0 %v4440_v1 }
 0x8c2   :  { %3885 = vmatpush3.bf16.msra.mxu1 %v3884_v50  ;;  %v2556_v50 = vld [vmem:[#allocation14 + $0x220] sm:$0xff] }
 0x8c3   :  { %3477 = vmatprep.subr.mxu1 %v4440_v1 }
 0x8c4   :  { %3503 = vmatpush3.msk.msra.mxu0 %vm1606_vm7, %v1912_v53 }
 0x8c5   :  { %3505 = vmatmul.mubr.msk.f32.vlgmr.msra.gmra.mrb[6].mxu0 %vm1603_vm9, %v1990_v55  ;;  %3916 = vmatprep.subr.bf16.mxu0 %v4445_v44  ;;  %v2559_v55 = vld [vmem:[#allocation14 + $0x238] sm:$0xff] }
 0x8c6   :  { %3478 = vmatpush3.msk.msra.mxu1 %vm1606_vm7, %v1912_v53  ;;  %3918 = vmatpush3.bf16.msra.mxu0 %v3902_v54  ;;  %v3995_v53 = vpack.c.bf16 %v2557_v51, %v2556_v50 }
 0x8c7   :  { %3480 = vmatmul.mubr.msk.f32.vlgmr.msra.gmra.mrb[6].mxu1 %vm1603_vm9, %v1913_v58  ;;  %3901 = vmatprep.subr.bf16.mxu1 %v4445_v44  ;;  %v2561_v58 = vld [vmem:[#allocation14 + $0x248] sm:$0xff] }
 0x8c8   :  { %3903 = vmatpush3.bf16.msra.mxu1 %v3902_v54  ;;  %3919 = vmatprep.subr.bf16.mxu0 %v4445_v44  ;;  %v2558_v54 = vld [vmem:[#allocation14 + $0x230] sm:$0xff] }
 0x8c9   :  { %3904 = vmatprep.subr.bf16.mxu1 %v4445_v44  ;;  %3554 = vmatprep.mubr.msk.f32.mxu0 %vm4446_vm8, %v4440_v1  ;;  %v3998_v56 = vpack.c.bf16 %v2559_v55, %v2558_v54 }
 0x8ca   :  { %3921 = vmatpush3.bf16.msra.mxu0 %v3905_v59  ;;  %3529 = vmatprep.mubr.msk.f32.mxu1 %vm4446_vm8, %v4440_v1 }
 0x8cb   :  { %3922 = vmatprep.subr.bf16.mxu0 %v4445_v44 }
 0x8cc   :  { %3906 = vmatpush3.bf16.msra.mxu1 %v3905_v59  ;;  %v4001_v59 = vpack.c.bf16 %v2561_v58, %v2560_v57 }
 0x8cd   :  { %3907 = vmatprep.subr.bf16.mxu1 %v4445_v44 }
 0x8ce   :  { %3924 = vmatpush3.bf16.msra.mxu0 %v3908_v62 }
 0x8cf   :  { %3925 = vmatprep.subr.bf16.mxu0 %v4445_v44 }
 0x8d0   :  { %3909 = vmatpush3.bf16.msra.mxu1 %v3908_v62  ;;  %v4004_v62 = vpack.c.bf16 %v2563_v61, %v2562_v60 }
 0x8d1   :  { %3910 = vmatprep.subr.bf16.mxu1 %v4445_v44 }
 0x8d2   :  { %3927 = vmatpush3.bf16.msra.mxu0 %v3911_v2 }
 0x8d3   :  { %3928 = vmatprep.subr.bf16.mxu0 %v4445_v44 }
 0x8d4   :  { %3912 = vmatpush3.bf16.msra.mxu1 %v3911_v2  ;;  %v2564_v2 = vld [vmem:[#allocation14 + $0x260] sm:$0x1] }
 0x8d5   :  { %3913 = vmatprep.subr.bf16.mxu1 %v4445_v44 }
 0x8d6   :  { %3930 = vmatpush3.bf16.msra.mxu0 %v3914_v5 }
 0x8d7   :  { %3552 = vmatprep.subr.mxu0 %v4440_v1 }
 0x8d8   :  { %3915 = vmatpush3.bf16.msra.mxu1 %v3914_v5  ;;  %v2719_v5 = vld [vmem:[#allocation14 + $0x278] sm:$0xff] }
 0x8d9   :  { %3527 = vmatprep.subr.mxu1 %v4440_v1 }
 0x8da   :  { %3553 = vmatpush3.msk.msra.mxu0 %vm1606_vm7, %v2075_v8 }
 0x8db   :  { %3555 = vmatmul.mubr.msk.f32.vlgmr.msra.gmra.mrb[6].mxu0 %vm1603_vm9, %v2153_v10  ;;  %3946 = vmatprep.subr.bf16.mxu0 %v4445_v44  ;;  %v2722_v10 = vld [vmem:[#allocation14 + $0x290] sm:$0xff] }
 0x8dc   :  { %3528 = vmatpush3.msk.msra.mxu1 %vm1606_vm7, %v2075_v8  ;;  %3948 = vmatpush3.bf16.msra.mxu0 %v3932_v9  ;;  %v4025_v8 = vpack.c.bf16 %v2720_v6, %v2719_v5 }
 0x8dd   :  { %3530 = vmatmul.mubr.msk.f32.vlgmr.msra.gmra.mrb[6].mxu1 %vm1603_vm9, %v2076_v13  ;;  %3931 = vmatprep.subr.bf16.mxu1 %v4445_v44  ;;  %v2724_v13 = vld [vmem:[#allocation14 + $0x2a0] sm:$0xff] }
 0x8de   :  { %3933 = vmatpush3.bf16.msra.mxu1 %v3932_v9  ;;  %3949 = vmatprep.subr.bf16.mxu0 %v4445_v44  ;;  %v2721_v9 = vld [vmem:[#allocation14 + $0x288] sm:$0xff] }
 0x8df   :  { %3934 = vmatprep.subr.bf16.mxu1 %v4445_v44  ;;  %3604 = vmatprep.mubr.msk.f32.mxu0 %vm4446_vm8, %v4440_v1  ;;  %v4028_v11 = vpack.c.bf16 %v2722_v10, %v2721_v9 }
 0x8e0   :  { %3951 = vmatpush3.bf16.msra.mxu0 %v3935_v14  ;;  %3579 = vmatprep.mubr.msk.f32.mxu1 %vm4446_vm8, %v4440_v1 }
 0x8e1   :  { %3952 = vmatprep.subr.bf16.mxu0 %v4445_v44 }
 0x8e2   :  { %3936 = vmatpush3.bf16.msra.mxu1 %v3935_v14  ;;  %v4031_v14 = vpack.c.bf16 %v2724_v13, %v2723_v12 }
 0x8e3   :  { %3937 = vmatprep.subr.bf16.mxu1 %v4445_v44 }
 0x8e4   :  { %3954 = vmatpush3.bf16.msra.mxu0 %v3938_v18 }
 0x8e5   :  { %3955 = vmatprep.subr.bf16.mxu0 %v4445_v44 }
 0x8e6   :  { %3939 = vmatpush3.bf16.msra.mxu1 %v3938_v18  ;;  %v4034_v18 = vpack.c.bf16 %v2726_v17, %v2725_v15 }
 0x8e7   :  { %3940 = vmatprep.subr.bf16.mxu1 %v4445_v44 }
 0x8e8   :  { %3957 = vmatpush3.bf16.msra.mxu0 %v3941_v22 }
 0x8e9   :  { %3958 = vmatprep.subr.bf16.mxu0 %v4445_v44 }
 0x8ea   :  { %3942 = vmatpush3.bf16.msra.mxu1 %v3941_v22  ;;  %v2893_v22 = vld [vmem:[%s5026_s12 + $0x8] sm:$0xff] }
 0x8eb   :  { %3943 = vmatprep.subr.bf16.mxu1 %v4445_v44  ;;  %v4052_v24 = vpack.c.bf16 %v2893_v22, %v2892_v21 }
 0x8ec   :  { %3960 = vmatpush3.bf16.msra.mxu0 %v3944_v25 }
 0x8ed   :  { %3602 = vmatprep.subr.mxu0 %v4440_v1 }
 0x8ee   :  { %3945 = vmatpush3.bf16.msra.mxu1 %v3944_v25  ;;  %v2728_v25 = vrot.slane %v4812_v19, 7  ;;  %v2896_v19 = vld [vmem:[%s5026_s12 + $0x20] sm:$0xff] }
 0x8ef   :  { %3577 = vmatprep.subr.mxu1 %v4440_v1 }
 0x8f0   :  { %3603 = vmatpush3.msk.msra.mxu0 %vm1606_vm7, %v2238_v28 }
 0x8f1   :  { %3605 = vmatmul.mubr.msk.f32.vlgmr.msra.gmra.mrb[6].mxu0 %vm1603_vm9, %v2316_v30  ;;  %3976 = vmatprep.subr.bf16.mxu0 %v4445_v44  ;;  %v2899_v30 = vld [vmem:[%s5026_s12 + $0x38] sm:$0xff] }
 0x8f2   :  { %3578 = vmatpush3.msk.msra.mxu1 %vm1606_vm7, %v2238_v28  ;;  %3978 = vmatpush3.bf16.msra.mxu0 %v3962_v29  ;;  %v2897_v28 = vld [vmem:[%s5026_s12 + $0x28] sm:$0xff] }
 0x8f3   :  { %3580 = vmatmul.mubr.msk.f32.vlgmr.msra.gmra.mrb[6].mxu1 %vm1603_vm9, %v2239_v33  ;;  %3961 = vmatprep.subr.bf16.mxu1 %v4445_v44  ;;  %v2983_v33 = vld [vmem:[#allocation16 + $0x8] sm:$0xff] }
 0x8f4   :  { %3963 = vmatpush3.bf16.msra.mxu1 %v3962_v29  ;;  %3979 = vmatprep.subr.bf16.mxu0 %v4445_v44  ;;  %v4058_v29 = vpack.c.bf16 %v2897_v28, %v2896_v19 }
 0x8f5   :  { %3964 = vmatprep.subr.bf16.mxu1 %v4445_v44  ;;  %3654 = vmatprep.mubr.msk.f32.mxu0 %vm4446_vm8, %v4440_v1 }
 0x8f6   :  { %3981 = vmatpush3.bf16.msra.mxu0 %v3965_v34  ;;  %3629 = vmatprep.mubr.msk.f32.mxu1 %vm4446_vm8, %v4440_v1 }
 0x8f7   :  { %3982 = vmatprep.subr.bf16.mxu0 %v4445_v44 }
 0x8f8   :  { %3966 = vmatpush3.bf16.msra.mxu1 %v3965_v34  ;;  %v4064_v34 = vpack.c.bf16 %v2983_v33, %v2982_v32 }
 0x8f9   :  { %3967 = vmatprep.subr.bf16.mxu1 %v4445_v44 }
 0x8fa   :  { %3984 = vmatpush3.bf16.msra.mxu0 %v3968_v37 }
 0x8fb   :  { %3985 = vmatprep.subr.bf16.mxu0 %v4445_v44 }
 0x8fc   :  { %3969 = vmatpush3.bf16.msra.mxu1 %v3968_v37 }
 0x8fd   :  { %3970 = vmatprep.subr.bf16.mxu1 %v4445_v44 }
 0x8fe   :  { %3987 = vmatpush3.bf16.msra.mxu0 %v3971_v40 }
 0x8ff   :  { %3988 = vmatprep.subr.bf16.mxu0 %v4445_v44 }
 0x900   :  { %3972 = vmatpush3.bf16.msra.mxu1 %v3971_v40 }
 0x901   :  { %3973 = vmatprep.subr.bf16.mxu1 %v4445_v44 }
 0x902   :  { %3990 = vmatpush3.bf16.msra.mxu0 %v3974_v43 }
 0x903   :  { %3652 = vmatprep.subr.mxu0 %v4440_v1 }
 0x904   :  { %3975 = vmatpush3.bf16.msra.mxu1 %v3974_v43 }
 0x905   :  { %3627 = vmatprep.subr.mxu1 %v4440_v1 }
 0x906   :  { %3653 = vmatpush3.msk.msra.mxu0 %vm1606_vm7, %v2401_v47 }
 0x907   :  { %3655 = vmatmul.mubr.msk.f32.vlgmr.msra.gmra.mrb[6].mxu0 %vm1603_vm9, %v2479_v49  ;;  %4006 = vmatprep.subr.bf16.mxu0 %v4445_v44 }
 0x908   :  { %3628 = vmatpush3.msk.msra.mxu1 %vm1606_vm7, %v2401_v47  ;;  %4008 = vmatpush3.bf16.msra.mxu0 %v3992_v48  ;;  %v4067_v47 = vpack.c.bf16 %v2985_v46, %v2984_v45 }
 0x909   :  { %3630 = vmatmul.mubr.msk.f32.vlgmr.msra.gmra.mrb[6].mxu1 %vm1603_vm9, %v2402_v52  ;;  %3991 = vmatprep.subr.bf16.mxu1 %v4445_v44  ;;  %v3149_v52 = vld [vmem:[#allocation2] ss:$0 sm:$0xff] }
 0x90a   :  { %3993 = vmatpush3.bf16.msra.mxu1 %v3992_v48  ;;  %4009 = vmatprep.subr.bf16.mxu0 %v4445_v44 }
 0x90b   :  { %3994 = vmatprep.subr.bf16.mxu1 %v4445_v44  ;;  %3704 = vmatprep.mubr.msk.f32.mxu0 %vm4446_vm8, %v4440_v1 }
 0x90c   :  { %4011 = vmatpush3.bf16.msra.mxu0 %v3995_v53  ;;  %3679 = vmatprep.mubr.msk.f32.mxu1 %vm4446_vm8, %v4440_v1 }
 0x90d   :  { %4012 = vmatprep.subr.bf16.mxu0 %v4445_v44 }
 0x90e   :  { %3996 = vmatpush3.bf16.msra.mxu1 %v3995_v53 }
 0x90f   :  { %3997 = vmatprep.subr.bf16.mxu1 %v4445_v44 }
 0x910   :  { %4014 = vmatpush3.bf16.msra.mxu0 %v3998_v56 }
 0x911   :  { %4015 = vmatprep.subr.bf16.mxu0 %v4445_v44 }
 0x912   :  { %3999 = vmatpush3.bf16.msra.mxu1 %v3998_v56 }
 0x913   :  { %4000 = vmatprep.subr.bf16.mxu1 %v4445_v44 }
 0x914   :  { %4017 = vmatpush3.bf16.msra.mxu0 %v4001_v59 }
 0x915   :  { %4018 = vmatprep.subr.bf16.mxu0 %v4445_v44 }
 0x916   :  { %4002 = vmatpush3.bf16.msra.mxu1 %v4001_v59 }
 0x917   :  { %4003 = vmatprep.subr.bf16.mxu1 %v4445_v44 }
 0x918   :  { %4020 = vmatpush3.bf16.msra.mxu0 %v4004_v62 }
 0x919   :  { %3702 = vmatprep.subr.mxu0 %v4440_v1 }
 0x91a   :  { %4005 = vmatpush3.bf16.msra.mxu1 %v4004_v62 }
 0x91b   :  { %3677 = vmatprep.subr.mxu1 %v4440_v1 }
 0x91c   :  { %3703 = vmatpush3.msk.msra.mxu0 %vm1606_vm7, %v2564_v2 }
 0x91d   :  { %3705 = vmatmul.mubr.msk.f32.vlgmr.msra.gmra.mrb[6].mxu0 %vm1603_vm9, %v2642_v4  ;;  %4036 = vmatprep.subr.bf16.mxu0 %v4445_v44 }
 0x91e   :  { %3678 = vmatpush3.msk.msra.mxu1 %vm1606_vm7, %v2564_v2  ;;  %4038 = vmatpush3.bf16.msra.mxu0 %v4022_v3 }
 0x91f   :  { %3680 = vmatmul.mubr.msk.f32.vlgmr.msra.gmra.mrb[6].mxu1 %vm1603_vm9, %v2565_v7  ;;  %4021 = vmatprep.subr.bf16.mxu1 %v4445_v44 }
 0x920   :  { %4023 = vmatpush3.bf16.msra.mxu1 %v4022_v3  ;;  %4039 = vmatprep.subr.bf16.mxu0 %v4445_v44 }
 0x921   :  { %4024 = vmatprep.subr.bf16.mxu1 %v4445_v44  ;;  %3754 = vmatprep.mubr.msk.f32.mxu0 %vm4446_vm8, %v4440_v1 }
 0x922   :  { %4041 = vmatpush3.bf16.msra.mxu0 %v4025_v8  ;;  %3729 = vmatprep.mubr.msk.f32.mxu1 %vm4446_vm8, %v4440_v1 }
 0x923   :  { %4042 = vmatprep.subr.bf16.mxu0 %v4445_v44 }
 0x924   :  { %4026 = vmatpush3.bf16.msra.mxu1 %v4025_v8 }
 0x925   :  { %4027 = vmatprep.subr.bf16.mxu1 %v4445_v44 }
 0x926   :  { %4044 = vmatpush3.bf16.msra.mxu0 %v4028_v11 }
 0x927   :  { %4045 = vmatprep.subr.bf16.mxu0 %v4445_v44 }
 0x928   :  { %4029 = vmatpush3.bf16.msra.mxu1 %v4028_v11 }
 0x929   :  { %4030 = vmatprep.subr.bf16.mxu1 %v4445_v44 }
 0x92a   :  { %4047 = vmatpush3.bf16.msra.mxu0 %v4031_v14 }
 0x92b   :  { %4048 = vmatprep.subr.bf16.mxu0 %v4445_v44 }
 0x92c   :  { %4032 = vmatpush3.bf16.msra.mxu1 %v4031_v14 }
 0x92d   :  { %4033 = vmatprep.subr.bf16.mxu1 %v4445_v44 }
 0x92e   :  { %4050 = vmatpush3.bf16.msra.mxu0 %v4034_v18 }
 0x92f   :  { %3752 = vmatprep.subr.mxu0 %v4440_v1 }
 0x930   :  { %4035 = vmatpush3.bf16.msra.mxu1 %v4034_v18 }
 0x931   :  { %3727 = vmatprep.subr.mxu1 %v4440_v1 }
 0x932   :  { %3753 = vmatpush3.msk.msra.mxu0 %vm1606_vm7, %v2727_v20 }
 0x933   :  { %3755 = vmatmul.mubr.msk.f32.vlgmr.msra.gmra.mrb[6].mxu0 %vm1603_vm9, %v2805_v23  ;;  %4063 = vmatprep.subr.bf16.mxu0 %v4445_v44 }
 0x934   :  { %3728 = vmatpush3.msk.msra.mxu1 %vm1606_vm7, %v2727_v20  ;;  %3784 = vmatprep.mubr.msk.f32.mxu0 %vm4446_vm8, %v4440_v1 }
 0x935   :  { %3730 = vmatmul.mubr.msk.f32.vlgmr.msra.gmra.mrb[6].mxu1 %vm1603_vm9, %v2728_v25  ;;  %4051 = vmatprep.subr.bf16.mxu1 %v4445_v44 }
 0x936   :  { %4053 = vmatpush3.bf16.msra.mxu1 %v4052_v24  ;;  %3773 = vmatprep.mubr.msk.f32.mxu1 %vm4446_vm8, %v4440_v1  ;;  %v2898_v1 = vld [vmem:[%s5026_s12 + $0x30] sm:$0xff] }
 0x937   :  { %4054 = vmatprep.subr.bf16.mxu1 %v4445_v44  ;;  %v4061_v31 = vpack.c.bf16 %v2899_v30, %v2898_v1  ;;  %4065 = vmatpush3.bf16.msra.mxu0 %v4064_v34 }
 0x938   :  { %4066 = vmatprep.subr.bf16.mxu0 %v4445_v44 }
 0x93a   :  { %4056 = vmatpush3.bf16.msra.mxu1 %v4055_v16 }
 0x93b   :  { %4057 = vmatprep.subr.bf16.mxu1 %v4445_v44  ;;  %4068 = vmatpush3.bf16.msra.mxu0 %v4067_v47 }
 0x93e   :  { %4059 = vmatpush3.bf16.msra.mxu1 %v4058_v29 }
 0x93f   :  { %4060 = vmatprep.subr.bf16.mxu1 %v4445_v44  ;;  %v3147_v44 = vld [vmem:[%s5027_s13] ss:$0 sm:$0xff] }
 0x942   :  { %4062 = vmatpush3.bf16.msra.mxu1 %v4061_v31 }
 0xa06   :  { %v2874_v35 = vpop.f32.mrb[6].mxu0 }
 0xa07   :  { %v2880_v36 = vrot.slane %v2874_v35, 7  ;;  %v3756_v37 = vpop.f32.mrb[7].mxu0 }
 0xa08   :  { %v2800_v39 = vpop.f32.mrb[6].mxu1 }
 0xa09   :  { %v2882_v40 = vsel %vm1606_vm7, %v2800_v39, %v2880_v36  ;;  %v3731_v41 = vpop.f32.mrb[7].mxu1 }
 0xa0a   :  { %v2890_v42 = vadd.f32 %v3146_v38, %v2882_v40 }
 0xa0c   :  { %v2891_v43 = vmax.f32 %v2890_v42, 0.0 }
 0xa0e   :  { %3774 = vmatmul.mubr.msk.f32.vlgmr.msra.gmra.mrb[8].mxu1 %vm2907_vm10, %v2891_v43 }
 0xae1   :  { %v2977_v48 = vpop.f32.mrb[8].mxu1 }
 0xae2   :  { %v2978_v49 = vadd.f32 %v3147_v44, %v2977_v48  ;;  %v3775_v50 = vpop.f32.mrb[9].mxu1 }
 0xae4   :  { %v2981_v51 = vmax.f32 %v2978_v49, 0.0 }
 0xae6   :  { %3785 = vmatmul.mubr.msk.f32.vlgmr.msra.gmra.mrb[8].mxu0 %vm2993_vm11, %v2981_v51 }
 0xbb9   :  { %v3063_v53 = vpop.f32.mrb[8].mxu0 }
 0xbba   :  { %v3064_v54 = vadd.f32 %v3149_v52, %v3063_v53  ;;  %v3786_v55 = vpop.f32.mrb[9].mxu0 }
 0xbbc   :  { %v3067_v56 = vsub.f32 0.0, %v3064_v54 }
 0xbbe   :  { %v3068_v57 = vmul.f32 1.442695, %v3067_v56 }
 0xbc0   :  { %4217 = vpow2.f32 %v3068_v57 }
 0xbca   :  { %v4218_v58 = vpop.eup %4217 }
 0xbcb   :  { %v3070_v59 = vadd.f32 1.0, %v4218_v58 }
 0xbcd   :  { %4219 = vrcp.f32 %v3070_v59 }
 0xbd7   :  { %v4220_v60 = vpop.eup %4219 }
 0xbd8   :  { %3074 = vst.msk [vmem:[%s5030_s16] sm:$0x3] %vm3073_vm12, %v4220_v60 }
 0xbd9   :  { %3079 = vsyncpa [#allocation4], 1 }
 0xbda   :  { %3080 = vsyncpa [#allocation6], 1 }
 0xbdb   :  { %3081 = vsyncpa [#allocation9], 1 }
 0xbdc   :  { %3082 = vsyncpa [#allocation12], 1 }
 0xbdd   :  { %3083 = vsyncpa [#allocation15], 1 }

</bundles_post_ra>
